<compile_context>
chip_gen: v5e
topology: v5e:2x2
jax: 0.10.0
libtpu: 0.0.40
codegen_flags: <defaults>
</compile_context>

<pallas_src>
import functools
import math

import jax
import jax.numpy as jnp
from jax.experimental import pallas as pl
from jax.experimental.pallas import tpu as pltpu


# ---------------------------------------------------------------------------
# Kernel
# ---------------------------------------------------------------------------
def _layer_norm(x, w, b, eps=1e-5):
    mu = jnp.mean(x, axis=-1, keepdims=True)
    var = jnp.mean((x - mu) ** 2, axis=-1, keepdims=True)
    return (x - mu) * jax.lax.rsqrt(var + eps) * w + b


def fused_transformer_kernel(x_ref, pe_ref,
                             wqkv_ref, bqkv_ref, wo_ref, bo_ref,
                             w1_ref, b1_ref, w2_ref, b2_ref,
                             ln1w_ref, ln1b_ref, ln2w_ref, ln2b_ref,
                             fcw_ref, fcb_ref,
                             o_ref, *, nhead):
    """Full post-norm encoder stack + classification head for one batch block."""
    bblk, S, D = x_ref.shape
    num_layers = wqkv_ref.shape[0]
    dh = D // nhead
    scale = 1.0 / math.sqrt(dh)
    mm_dtype = wqkv_ref.dtype          # bf16 weights -> cast activations only at MXU ops

    # embedding scale + positional encoding (dropout = identity in eval mode)
    x = x_ref[...] * math.sqrt(D) + pe_ref[...]            # (bblk, S, D), f32
    xt = x.reshape(bblk * S, D)                             # token-major activation

    # num_layers is small (unrolled).  If the stack grows beyond a handful of layers,
    # switch this to lax.fori_loop with dynamic w_ref[li] indexing to bound vreg
    # pressure / compile time.
    for li in range(num_layers):
        # ---- fused QKV projection: one lane-dense (N, D) @ (D, 3D) matmul ----------
        qkv = jnp.dot(xt.astype(mm_dtype), wqkv_ref[li],
                      preferred_element_type=jnp.float32) + bqkv_ref[li]   # (N, 3D)

        # ---- per-row scaled-dot-product attention (static loops over bblk, heads) --
        ctx_rows = []
        for r in range(bblk):
            row = qkv[r * S:(r + 1) * S]                    # (S, 3D)
            heads = []
            for h in range(nhead):
                q = row[:, h * dh:(h + 1) * dh]                       # (S, dh)
                k = row[:, D + h * dh:D + (h + 1) * dh]               # (S, dh)
                v = row[:, 2 * D + h * dh:2 * D + (h + 1) * dh]       # (S, dh)
                # scores = q @ k^T via dot_general (no in-kernel transpose)
                s = jax.lax.dot_general(q, k, (((1,), (1,)), ((), ())),
                                        preferred_element_type=jnp.float32) * scale
                s = s - jnp.max(s, axis=-1, keepdims=True)
                p = jnp.exp(s)
                p = p * pl.reciprocal(jnp.sum(p, axis=-1, keepdims=True), approx=True)
                heads.append(jnp.dot(p, v, preferred_element_type=jnp.float32))
            ctx_rows.append(jnp.concatenate(heads, axis=-1))           # (S, D)
        ctx = jnp.concatenate(ctx_rows, axis=0) if bblk > 1 else ctx_rows[0]  # (N, D)

        # ---- single lane-dense output projection ------------------------------------
        attn = jnp.dot(ctx.astype(mm_dtype), wo_ref[li],
                       preferred_element_type=jnp.float32) + bo_ref[li]

        # residual + norm1 (post-norm, PyTorch default), f32 VPU math
        xt = _layer_norm(xt + attn, ln1w_ref[li], ln1b_ref[li])

        # ---- feed-forward (ReLU) -----------------------------------------------------
        ff = jnp.dot(xt.astype(mm_dtype), w1_ref[li],
                     preferred_element_type=jnp.float32) + b1_ref[li]
        ff = jnp.maximum(ff, 0.0)
        ff = jnp.dot(ff.astype(mm_dtype), w2_ref[li],
                     preferred_element_type=jnp.float32) + b2_ref[li]

        # residual + norm2
        xt = _layer_norm(xt + ff, ln2w_ref[li], ln2b_ref[li])

    # ---- head: per-row mean over seq -> Linear -> exact sigmoid ----------------------
    means = [jnp.mean(xt[r * S:(r + 1) * S], axis=0, keepdims=True) for r in range(bblk)]
    m = jnp.concatenate(means, axis=0) if bblk > 1 else means[0]       # (bblk, D)
    y = jnp.dot(m.astype(mm_dtype), fcw_ref[...],
                preferred_element_type=jnp.float32) + fcb_ref[...]     # (bblk, out)
    o_ref[0] = 1.0 / (1.0 + jnp.exp(-y))                               # exact sigmoid


# ---------------------------------------------------------------------------
# Pallas wrapper
# ---------------------------------------------------------------------------
def transformer_forward(tokens, params, *, nhead, block_b=8):
    # tokens: (B, S) int32.  Embedding gather stays in plain JAX (data-dependent).
    B, S = tokens.shape
    emb = jnp.take(params["embedding"], tokens, axis=0)        # (B, S, D) f32
    pe = params["pe"][:S]                                      # (S, D)
    D = pe.shape[-1]
    out_dim = params["fcb"].shape[-1]

    # batch blocking: fat blocks amortize per-grid-step overhead; keep >= 2 grid steps
    # when B >= 2 so the v7x megacore (2 TCs) is not left half idle.
    bblk = min(block_b, B)
    if B >= 2 and pl.cdiv(B, bblk) < 2:
        bblk = pl.cdiv(B, 2)
    nb = pl.cdiv(B, bblk)
    Bp = nb * bblk
    if Bp > B:
        emb = jnp.pad(emb, ((0, Bp - B), (0, 0), (0, 0)))      # padded rows are discarded

    weights = (params["wqkv"], params["bqkv"], params["wo"], params["bo"],
               params["w1"], params["b1"], params["w2"], params["b2"],
               params["ln1w"], params["ln1b"], params["ln2w"], params["ln2b"],
               params["fcw"], params["fcb"])

    def full_spec(a):
        # whole tensor resident in VMEM, constant index map (DMA'd once, stays put)
        return pl.BlockSpec(a.shape, lambda b, _nd=a.ndim: (0,) * _nd)

    kernel = functools.partial(fused_transformer_kernel, nhead=nhead)

    out = pl.pallas_call(
        kernel,
        out_shape=jax.ShapeDtypeStruct((nb, bblk, out_dim), jnp.float32),
        grid_spec=pltpu.PrefetchScalarGridSpec(
            num_scalar_prefetch=0,
            grid=(nb,),
            in_specs=[pl.BlockSpec((bblk, S, D), lambda b: (b, 0, 0)),  # batch slab
                      full_spec(pe)]
                     + [full_spec(w) for w in weights],
            out_specs=pl.BlockSpec((1, bblk, out_dim), lambda b: (b, 0, 0)),
        ),
        compiler_params=pltpu.CompilerParams(dimension_semantics=("parallel",)),
    )(emb, pe, *weights)
    return out.reshape(Bp, out_dim)[:B]


# ---------------------------------------------------------------------------
# Parameter construction (PyTorch-layout weights -> kernel layout)
# ---------------------------------------------------------------------------
def positional_encoding(max_len, d_model):
    pos = jnp.arange(max_len, dtype=jnp.float32)[:, None]
    div = jnp.exp(jnp.arange(0, d_model, 2, dtype=jnp.float32)
                  * (-math.log(10000.0) / d_model))
    pe = jnp.zeros((max_len, d_model), jnp.float32)
    pe = pe.at[:, 0::2].set(jnp.sin(pos * div))
    pe = pe.at[:, 1::2].set(jnp.cos(pos * div))
    return pe


def init_params(key, *, input_dim, output_dim, d_model, nhead, num_layers,
                dim_ff, max_len, mm_dtype=jnp.bfloat16):
    def normal(k, shape, scale=0.05):
        return scale * jax.random.normal(k, shape, jnp.float32)

    keys = jax.random.split(key, 3 + num_layers)
    acc = {k: [] for k in ("wqkv", "bqkv", "wo", "bo", "w1", "b1", "w2", "b2",
                           "ln1w", "ln1b", "ln2w", "ln2b")}

    for li in range(num_layers):
        ks = jax.random.split(keys[3 + li], 8)
        # PyTorch-layout weights (as nn.TransformerEncoderLayer stores them)
        in_proj_w = normal(ks[0], (3 * d_model, d_model))   # in_proj_weight (q|k|v rows)
        in_proj_b = normal(ks[1], (3 * d_model,))           # in_proj_bias
        wo = normal(ks[2], (d_model, d_model))              # out_proj.weight
        bo = normal(ks[3], (d_model,))
        w1 = normal(ks[4], (dim_ff, d_model))                # linear1.weight
        b1 = normal(ks[5], (dim_ff,))
        w2 = normal(ks[6], (d_model, dim_ff))                # linear2.weight
        b2 = normal(ks[7], (d_model,))
        # kernel layout: lane-dense, pre-transposed (kernel only does x @ W)
        acc["wqkv"].append(in_proj_w.T)                      # (D, 3D), cols = q|k|v
        acc["bqkv"].append(in_proj_b.reshape(1, 3 * d_model))
        acc["wo"].append(wo.T)                               # (D, D)
        acc["bo"].append(bo.reshape(1, d_model))
        acc["w1"].append(w1.T)                               # (D, FF)
        acc["b1"].append(b1.reshape(1, dim_ff))
        acc["w2"].append(w2.T)                               # (FF, D)
        acc["b2"].append(b2.reshape(1, d_model))
        acc["ln1w"].append(jnp.ones((1, d_model), jnp.float32))
        acc["ln1b"].append(jnp.zeros((1, d_model), jnp.float32))
        acc["ln2w"].append(jnp.ones((1, d_model), jnp.float32))
        acc["ln2b"].append(jnp.zeros((1, d_model), jnp.float32))

    params = {k: jnp.stack(v) for k, v in acc.items()}       # leading num_layers axis
    # MXU-operand weights in bf16 (f32 accumulate in-kernel); biases/LN stay f32.
    for k in ("wqkv", "wo", "w1", "w2"):
        params[k] = params[k].astype(mm_dtype)

    kf = jax.random.split(keys[1], 2)
    params["embedding"] = normal(keys[0], (input_dim, d_model), scale=1.0)
    params["pe"] = positional_encoding(max_len, d_model)
    params["fcw"] = normal(kf[0], (output_dim, d_model)).T.astype(mm_dtype)   # (D, out)
    params["fcb"] = normal(kf[1], (1, output_dim))
    # TODO(synk): biases drawn from normal (PyTorch uses zeros/uniform init); irrelevant
    # unless comparing against a torch-initialized checkpoint rather than loaded weights.
    return params


# ---------------------------------------------------------------------------
if __name__ == "__main__":
    input_dim, output_dim = 50, 4            # vocab size, num classes
    d_model, nhead, num_layers = 32, 4, 2
    dim_feedforward, max_len = 64, 16
    B, S = 2, 8

    key = jax.random.PRNGKey(0)
    k_tok, k_par = jax.random.split(key)
    tokens = jax.random.randint(k_tok, (B, S), 0, input_dim, dtype=jnp.int32)
    params = init_params(k_par, input_dim=input_dim, output_dim=output_dim,
                         d_model=d_model, nhead=nhead, num_layers=num_layers,
                         dim_ff=dim_feedforward, max_len=max_len)

    fwd = jax.jit(functools.partial(transformer_forward, nhead=nhead))
    out = fwd(tokens, params)
    jax.block_until_ready(out)
    assert out.shape == (B, output_dim) and out.dtype == jnp.float32
    print("KERNEL_OK")
</pallas_src>

<mosaic_0001>
module attributes {stable_mosaic.version = 11 : i64} {
  func.func @fused_transformer_kernel(%arg0: i32, %arg1: memref<1x8x32xf32, #tpu.memory_space<vmem>>, %arg2: memref<8x32xf32, #tpu.memory_space<vmem>>, %arg3: memref<2x32x96xbf16, #tpu.memory_space<vmem>>, %arg4: memref<2x1x96xf32, #tpu.memory_space<vmem>>, %arg5: memref<2x32x32xbf16, #tpu.memory_space<vmem>>, %arg6: memref<2x1x32xf32, #tpu.memory_space<vmem>>, %arg7: memref<2x32x64xbf16, #tpu.memory_space<vmem>>, %arg8: memref<2x1x64xf32, #tpu.memory_space<vmem>>, %arg9: memref<2x64x32xbf16, #tpu.memory_space<vmem>>, %arg10: memref<2x1x32xf32, #tpu.memory_space<vmem>>, %arg11: memref<2x1x32xf32, #tpu.memory_space<vmem>>, %arg12: memref<2x1x32xf32, #tpu.memory_space<vmem>>, %arg13: memref<2x1x32xf32, #tpu.memory_space<vmem>>, %arg14: memref<2x1x32xf32, #tpu.memory_space<vmem>>, %arg15: memref<32x4xbf16, #tpu.memory_space<vmem>>, %arg16: memref<1x4xf32, #tpu.memory_space<vmem>>, %arg17: memref<1x1x4xf32, #tpu.memory_space<vmem>>) attributes {dimension_semantics = [#tpu.dimension_semantics<parallel>], iteration_bounds = array<i64: 2>, scalar_prefetch = 0 : i64, scratch_operands = 0 : i64, tpu.core_type = #tpu.core_type<tc>, window_params = [{transform_indices = @transform_0, window_bounds = array<i64: 1, 8, 32>}, {pipeline_mode = #tpu.pipeline_mode<synchronous>, transform_indices = @transform_1, window_bounds = array<i64: 8, 32>}, {pipeline_mode = #tpu.pipeline_mode<synchronous>, transform_indices = @transform_2, window_bounds = array<i64: 2, 32, 96>}, {pipeline_mode = #tpu.pipeline_mode<synchronous>, transform_indices = @transform_3, window_bounds = array<i64: 2, 1, 96>}, {pipeline_mode = #tpu.pipeline_mode<synchronous>, transform_indices = @transform_4, window_bounds = array<i64: 2, 32, 32>}, {pipeline_mode = #tpu.pipeline_mode<synchronous>, transform_indices = @transform_5, window_bounds = array<i64: 2, 1, 32>}, {pipeline_mode = #tpu.pipeline_mode<synchronous>, transform_indices = @transform_6, window_bounds = array<i64: 2, 32, 64>}, {pipeline_mode = #tpu.pipeline_mode<synchronous>, transform_indices = @transform_7, window_bounds = array<i64: 2, 1, 64>}, {pipeline_mode = #tpu.pipeline_mode<synchronous>, transform_indices = @transform_8, window_bounds = array<i64: 2, 64, 32>}, {pipeline_mode = #tpu.pipeline_mode<synchronous>, transform_indices = @transform_9, window_bounds = array<i64: 2, 1, 32>}, {pipeline_mode = #tpu.pipeline_mode<synchronous>, transform_indices = @transform_10, window_bounds = array<i64: 2, 1, 32>}, {pipeline_mode = #tpu.pipeline_mode<synchronous>, transform_indices = @transform_11, window_bounds = array<i64: 2, 1, 32>}, {pipeline_mode = #tpu.pipeline_mode<synchronous>, transform_indices = @transform_12, window_bounds = array<i64: 2, 1, 32>}, {pipeline_mode = #tpu.pipeline_mode<synchronous>, transform_indices = @transform_13, window_bounds = array<i64: 2, 1, 32>}, {pipeline_mode = #tpu.pipeline_mode<synchronous>, transform_indices = @transform_14, window_bounds = array<i64: 32, 4>}, {pipeline_mode = #tpu.pipeline_mode<synchronous>, transform_indices = @transform_15, window_bounds = array<i64: 1, 4>}, {transform_indices = @transform_16, window_bounds = array<i64: 1, 1, 4>}]} {
    %c0 = arith.constant 0 : index
    %c0_0 = arith.constant 0 : index
    %c0_1 = arith.constant 0 : index
    %0 = vector.load %arg1[%c0, %c0_0, %c0_1] : memref<1x8x32xf32, #tpu.memory_space<vmem>>, vector<1x8x32xf32>
    %cst = arith.constant 5.65685415 : f32
    %1 = vector.broadcast %cst : f32 to vector<1x8x32xf32>
    %2 = arith.mulf %0, %1 : vector<1x8x32xf32>
    %c0_2 = arith.constant 0 : index
    %c0_3 = arith.constant 0 : index
    %3 = vector.load %arg2[%c0_2, %c0_3] : memref<8x32xf32, #tpu.memory_space<vmem>>, vector<8x32xf32>
    %4 = vector.shape_cast %3 : vector<8x32xf32> to vector<1x8x32xf32>
    %5 = arith.addf %2, %4 : vector<1x8x32xf32>
    %6 = vector.shape_cast %5 : vector<1x8x32xf32> to vector<8x32xf32>
    %7 = arith.truncf %6 : vector<8x32xf32> to vector<8x32xbf16>
    %c0_4 = arith.constant 0 : index
    %c0_5 = arith.constant 0 : index
    %c0_6 = arith.constant 0 : index
    %8 = vector.load %arg3[%c0_4, %c0_5, %c0_6] : memref<2x32x96xbf16, #tpu.memory_space<vmem>>, vector<1x32x96xbf16>
    %9 = vector.shape_cast %8 : vector<1x32x96xbf16> to vector<32x96xbf16>
    %cst_7 = arith.constant dense<0.000000e+00> : vector<8x96xf32>
    %10 = tpu.matmul %7, %9, %cst_7 {dimension_numbers = #tpu.dot_dimension_numbers<[1], [0], [0], [1], [0, 0, 1, 1], [], []>} : vector<8x32xbf16>, vector<32x96xbf16>, vector<8x96xf32> -> vector<8x96xf32>
    %c0_8 = arith.constant 0 : index
    %c0_9 = arith.constant 0 : index
    %c0_10 = arith.constant 0 : index
    %11 = vector.load %arg4[%c0_8, %c0_9, %c0_10] : memref<2x1x96xf32, #tpu.memory_space<vmem>>, vector<1x1x96xf32>
    %12 = vector.shape_cast %11 : vector<1x1x96xf32> to vector<1x96xf32>
    %13 = vector.broadcast %12 : vector<1x96xf32> to vector<8x96xf32>
    %14 = arith.addf %10, %13 : vector<8x96xf32>
    %15 = vector.extract_strided_slice %14 {offsets = [0, 0], sizes = [8, 8], strides = [1, 1]} : vector<8x96xf32> to vector<8x8xf32>
    %16 = vector.extract_strided_slice %14 {offsets = [0, 32], sizes = [8, 8], strides = [1, 1]} : vector<8x96xf32> to vector<8x8xf32>
    %17 = vector.extract_strided_slice %14 {offsets = [0, 64], sizes = [8, 8], strides = [1, 1]} : vector<8x96xf32> to vector<8x8xf32>
    %cst_11 = arith.constant dense<0.000000e+00> : vector<8x8xf32>
    %18 = tpu.matmul %15, %16, %cst_11 {dimension_numbers = #tpu.dot_dimension_numbers<[1], [1], [0], [0], [0, 0, 1, 0], [], []>} : vector<8x8xf32>, vector<8x8xf32>, vector<8x8xf32> -> vector<8x8xf32>
    %cst_12 = arith.constant 0.353553385 : f32
    %19 = vector.broadcast %cst_12 : f32 to vector<8x8xf32>
    %20 = arith.mulf %18, %19 : vector<8x8xf32>
    %cst_13 = arith.constant dense<0xFF800000> : vector<8xf32>
    %21 = vector.multi_reduction <maximumf>, %20, %cst_13 [1] : vector<8x8xf32> to vector<8xf32>
    %22 = vector.shape_cast %21 : vector<8xf32> to vector<8x1xf32>
    %23 = vector.broadcast %22 : vector<8x1xf32> to vector<8x8xf32>
    %24 = arith.subf %20, %23 : vector<8x8xf32>
    %25 = math.exp %24 : vector<8x8xf32>
    %cst_14 = arith.constant dense<0.000000e+00> : vector<8xf32>
    %26 = vector.multi_reduction <add>, %25, %cst_14 [1] : vector<8x8xf32> to vector<8xf32>
    %27 = vector.shape_cast %26 : vector<8xf32> to vector<8x1xf32>
    %28 = tpu.reciprocal %27 {approx = true} : vector<8x1xf32> -> vector<8x1xf32>
    %29 = vector.broadcast %28 : vector<8x1xf32> to vector<8x8xf32>
    %30 = arith.mulf %25, %29 : vector<8x8xf32>
    %cst_15 = arith.constant dense<0.000000e+00> : vector<8x8xf32>
    %31 = tpu.matmul %30, %17, %cst_15 {dimension_numbers = #tpu.dot_dimension_numbers<[1], [0], [0], [1], [0, 0, 1, 1], [], []>} : vector<8x8xf32>, vector<8x8xf32>, vector<8x8xf32> -> vector<8x8xf32>
    %32 = vector.extract_strided_slice %14 {offsets = [0, 8], sizes = [8, 8], strides = [1, 1]} : vector<8x96xf32> to vector<8x8xf32>
    %33 = vector.extract_strided_slice %14 {offsets = [0, 40], sizes = [8, 8], strides = [1, 1]} : vector<8x96xf32> to vector<8x8xf32>
    %34 = vector.extract_strided_slice %14 {offsets = [0, 72], sizes = [8, 8], strides = [1, 1]} : vector<8x96xf32> to vector<8x8xf32>
    %cst_16 = arith.constant dense<0.000000e+00> : vector<8x8xf32>
    %35 = tpu.matmul %32, %33, %cst_16 {dimension_numbers = #tpu.dot_dimension_numbers<[1], [1], [0], [0], [0, 0, 1, 0], [], []>} : vector<8x8xf32>, vector<8x8xf32>, vector<8x8xf32> -> vector<8x8xf32>
    %cst_17 = arith.constant 0.353553385 : f32
    %36 = vector.broadcast %cst_17 : f32 to vector<8x8xf32>
    %37 = arith.mulf %35, %36 : vector<8x8xf32>
    %cst_18 = arith.constant dense<0xFF800000> : vector<8xf32>
    %38 = vector.multi_reduction <maximumf>, %37, %cst_18 [1] : vector<8x8xf32> to vector<8xf32>
    %39 = vector.shape_cast %38 : vector<8xf32> to vector<8x1xf32>
    %40 = vector.broadcast %39 : vector<8x1xf32> to vector<8x8xf32>
    %41 = arith.subf %37, %40 : vector<8x8xf32>
    %42 = math.exp %41 : vector<8x8xf32>
    %cst_19 = arith.constant dense<0.000000e+00> : vector<8xf32>
    %43 = vector.multi_reduction <add>, %42, %cst_19 [1] : vector<8x8xf32> to vector<8xf32>
    %44 = vector.shape_cast %43 : vector<8xf32> to vector<8x1xf32>
    %45 = tpu.reciprocal %44 {approx = true} : vector<8x1xf32> -> vector<8x1xf32>
    %46 = vector.broadcast %45 : vector<8x1xf32> to vector<8x8xf32>
    %47 = arith.mulf %42, %46 : vector<8x8xf32>
    %cst_20 = arith.constant dense<0.000000e+00> : vector<8x8xf32>
    %48 = tpu.matmul %47, %34, %cst_20 {dimension_numbers = #tpu.dot_dimension_numbers<[1], [0], [0], [1], [0, 0, 1, 1], [], []>} : vector<8x8xf32>, vector<8x8xf32>, vector<8x8xf32> -> vector<8x8xf32>
    %49 = vector.extract_strided_slice %14 {offsets = [0, 16], sizes = [8, 8], strides = [1, 1]} : vector<8x96xf32> to vector<8x8xf32>
    %50 = vector.extract_strided_slice %14 {offsets = [0, 48], sizes = [8, 8], strides = [1, 1]} : vector<8x96xf32> to vector<8x8xf32>
    %51 = vector.extract_strided_slice %14 {offsets = [0, 80], sizes = [8, 8], strides = [1, 1]} : vector<8x96xf32> to vector<8x8xf32>
    %cst_21 = arith.constant dense<0.000000e+00> : vector<8x8xf32>
    %52 = tpu.matmul %49, %50, %cst_21 {dimension_numbers = #tpu.dot_dimension_numbers<[1], [1], [0], [0], [0, 0, 1, 0], [], []>} : vector<8x8xf32>, vector<8x8xf32>, vector<8x8xf32> -> vector<8x8xf32>
    %cst_22 = arith.constant 0.353553385 : f32
    %53 = vector.broadcast %cst_22 : f32 to vector<8x8xf32>
    %54 = arith.mulf %52, %53 : vector<8x8xf32>
    %cst_23 = arith.constant dense<0xFF800000> : vector<8xf32>
    %55 = vector.multi_reduction <maximumf>, %54, %cst_23 [1] : vector<8x8xf32> to vector<8xf32>
    %56 = vector.shape_cast %55 : vector<8xf32> to vector<8x1xf32>
    %57 = vector.broadcast %56 : vector<8x1xf32> to vector<8x8xf32>
    %58 = arith.subf %54, %57 : vector<8x8xf32>
    %59 = math.exp %58 : vector<8x8xf32>
    %cst_24 = arith.constant dense<0.000000e+00> : vector<8xf32>
    %60 = vector.multi_reduction <add>, %59, %cst_24 [1] : vector<8x8xf32> to vector<8xf32>
    %61 = vector.shape_cast %60 : vector<8xf32> to vector<8x1xf32>
    %62 = tpu.reciprocal %61 {approx = true} : vector<8x1xf32> -> vector<8x1xf32>
    %63 = vector.broadcast %62 : vector<8x1xf32> to vector<8x8xf32>
    %64 = arith.mulf %59, %63 : vector<8x8xf32>
    %cst_25 = arith.constant dense<0.000000e+00> : vector<8x8xf32>
    %65 = tpu.matmul %64, %51, %cst_25 {dimension_numbers = #tpu.dot_dimension_numbers<[1], [0], [0], [1], [0, 0, 1, 1], [], []>} : vector<8x8xf32>, vector<8x8xf32>, vector<8x8xf32> -> vector<8x8xf32>
    %66 = vector.extract_strided_slice %14 {offsets = [0, 24], sizes = [8, 8], strides = [1, 1]} : vector<8x96xf32> to vector<8x8xf32>
    %67 = vector.extract_strided_slice %14 {offsets = [0, 56], sizes = [8, 8], strides = [1, 1]} : vector<8x96xf32> to vector<8x8xf32>
    %68 = vector.extract_strided_slice %14 {offsets = [0, 88], sizes = [8, 8], strides = [1, 1]} : vector<8x96xf32> to vector<8x8xf32>
    %cst_26 = arith.constant dense<0.000000e+00> : vector<8x8xf32>
    %69 = tpu.matmul %66, %67, %cst_26 {dimension_numbers = #tpu.dot_dimension_numbers<[1], [1], [0], [0], [0, 0, 1, 0], [], []>} : vector<8x8xf32>, vector<8x8xf32>, vector<8x8xf32> -> vector<8x8xf32>
    %cst_27 = arith.constant 0.353553385 : f32
    %70 = vector.broadcast %cst_27 : f32 to vector<8x8xf32>
    %71 = arith.mulf %69, %70 : vector<8x8xf32>
    %cst_28 = arith.constant dense<0xFF800000> : vector<8xf32>
    %72 = vector.multi_reduction <maximumf>, %71, %cst_28 [1] : vector<8x8xf32> to vector<8xf32>
    %73 = vector.shape_cast %72 : vector<8xf32> to vector<8x1xf32>
    %74 = vector.broadcast %73 : vector<8x1xf32> to vector<8x8xf32>
    %75 = arith.subf %71, %74 : vector<8x8xf32>
    %76 = math.exp %75 : vector<8x8xf32>
    %cst_29 = arith.constant dense<0.000000e+00> : vector<8xf32>
    %77 = vector.multi_reduction <add>, %76, %cst_29 [1] : vector<8x8xf32> to vector<8xf32>
    %78 = vector.shape_cast %77 : vector<8xf32> to vector<8x1xf32>
    %79 = tpu.reciprocal %78 {approx = true} : vector<8x1xf32> -> vector<8x1xf32>
    %80 = vector.broadcast %79 : vector<8x1xf32> to vector<8x8xf32>
    %81 = arith.mulf %76, %80 : vector<8x8xf32>
    %cst_30 = arith.constant dense<0.000000e+00> : vector<8x8xf32>
    %82 = tpu.matmul %81, %68, %cst_30 {dimension_numbers = #tpu.dot_dimension_numbers<[1], [0], [0], [1], [0, 0, 1, 1], [], []>} : vector<8x8xf32>, vector<8x8xf32>, vector<8x8xf32> -> vector<8x8xf32>
    %83 = tpu.concatenate %31, %48, %65, %82 in 1 : vector<8x8xf32>, vector<8x8xf32>, vector<8x8xf32>, vector<8x8xf32> -> vector<8x32xf32>
    %84 = arith.truncf %83 : vector<8x32xf32> to vector<8x32xbf16>
    %c0_31 = arith.constant 0 : index
    %c0_32 = arith.constant 0 : index
    %c0_33 = arith.constant 0 : index
    %85 = vector.load %arg5[%c0_31, %c0_32, %c0_33] : memref<2x32x32xbf16, #tpu.memory_space<vmem>>, vector<1x32x32xbf16>
    %86 = vector.shape_cast %85 : vector<1x32x32xbf16> to vector<32x32xbf16>
    %cst_34 = arith.constant dense<0.000000e+00> : vector<8x32xf32>
    %87 = tpu.matmul %84, %86, %cst_34 {dimension_numbers = #tpu.dot_dimension_numbers<[1], [0], [0], [1], [0, 0, 1, 1], [], []>} : vector<8x32xbf16>, vector<32x32xbf16>, vector<8x32xf32> -> vector<8x32xf32>
    %c0_35 = arith.constant 0 : index
    %c0_36 = arith.constant 0 : index
    %c0_37 = arith.constant 0 : index
    %88 = vector.load %arg6[%c0_35, %c0_36, %c0_37] : memref<2x1x32xf32, #tpu.memory_space<vmem>>, vector<1x1x32xf32>
    %89 = vector.shape_cast %88 : vector<1x1x32xf32> to vector<1x32xf32>
    %90 = vector.broadcast %89 : vector<1x32xf32> to vector<8x32xf32>
    %91 = arith.addf %87, %90 : vector<8x32xf32>
    %92 = arith.addf %6, %91 : vector<8x32xf32>
    %c0_38 = arith.constant 0 : index
    %c0_39 = arith.constant 0 : index
    %c0_40 = arith.constant 0 : index
    %93 = vector.load %arg11[%c0_38, %c0_39, %c0_40] : memref<2x1x32xf32, #tpu.memory_space<vmem>>, vector<1x1x32xf32>
    %94 = vector.shape_cast %93 : vector<1x1x32xf32> to vector<1x32xf32>
    %c0_41 = arith.constant 0 : index
    %c0_42 = arith.constant 0 : index
    %c0_43 = arith.constant 0 : index
    %95 = vector.load %arg12[%c0_41, %c0_42, %c0_43] : memref<2x1x32xf32, #tpu.memory_space<vmem>>, vector<1x1x32xf32>
    %96 = vector.shape_cast %95 : vector<1x1x32xf32> to vector<1x32xf32>
    %cst_44 = arith.constant dense<0.000000e+00> : vector<8xf32>
    %97 = vector.multi_reduction <add>, %92, %cst_44 [1] : vector<8x32xf32> to vector<8xf32>
    %98 = vector.shape_cast %97 : vector<8xf32> to vector<8x1xf32>
    %cst_45 = arith.constant 3.200000e+01 : f32
    %99 = vector.broadcast %cst_45 : f32 to vector<8x1xf32>
    %100 = arith.divf %98, %99 : vector<8x1xf32>
    %101 = vector.broadcast %100 : vector<8x1xf32> to vector<8x32xf32>
    %102 = arith.subf %92, %101 : vector<8x32xf32>
    %103 = arith.mulf %102, %102 : vector<8x32xf32>
    %cst_46 = arith.constant dense<0.000000e+00> : vector<8xf32>
    %104 = vector.multi_reduction <add>, %103, %cst_46 [1] : vector<8x32xf32> to vector<8xf32>
    %105 = vector.shape_cast %104 : vector<8xf32> to vector<8x1xf32>
    %cst_47 = arith.constant 3.200000e+01 : f32
    %106 = vector.broadcast %cst_47 : f32 to vector<8x1xf32>
    %107 = arith.divf %105, %106 : vector<8x1xf32>
    %108 = vector.broadcast %100 : vector<8x1xf32> to vector<8x32xf32>
    %109 = arith.subf %92, %108 : vector<8x32xf32>
    %cst_48 = arith.constant 9.99999974E-6 : f32
    %110 = vector.broadcast %cst_48 : f32 to vector<8x1xf32>
    %111 = arith.addf %107, %110 : vector<8x1xf32>
    %112 = math.rsqrt %111 : vector<8x1xf32>
    %113 = vector.broadcast %112 : vector<8x1xf32> to vector<8x32xf32>
    %114 = arith.mulf %109, %113 : vector<8x32xf32>
    %115 = vector.broadcast %94 : vector<1x32xf32> to vector<8x32xf32>
    %116 = arith.mulf %114, %115 : vector<8x32xf32>
    %117 = vector.broadcast %96 : vector<1x32xf32> to vector<8x32xf32>
    %118 = arith.addf %116, %117 : vector<8x32xf32>
    %119 = arith.truncf %118 : vector<8x32xf32> to vector<8x32xbf16>
    %c0_49 = arith.constant 0 : index
    %c0_50 = arith.constant 0 : index
    %c0_51 = arith.constant 0 : index
    %120 = vector.load %arg7[%c0_49, %c0_50, %c0_51] : memref<2x32x64xbf16, #tpu.memory_space<vmem>>, vector<1x32x64xbf16>
    %121 = vector.shape_cast %120 : vector<1x32x64xbf16> to vector<32x64xbf16>
    %cst_52 = arith.constant dense<0.000000e+00> : vector<8x64xf32>
    %122 = tpu.matmul %119, %121, %cst_52 {dimension_numbers = #tpu.dot_dimension_numbers<[1], [0], [0], [1], [0, 0, 1, 1], [], []>} : vector<8x32xbf16>, vector<32x64xbf16>, vector<8x64xf32> -> vector<8x64xf32>
    %c0_53 = arith.constant 0 : index
    %c0_54 = arith.constant 0 : index
    %c0_55 = arith.constant 0 : index
    %123 = vector.load %arg8[%c0_53, %c0_54, %c0_55] : memref<2x1x64xf32, #tpu.memory_space<vmem>>, vector<1x1x64xf32>
    %124 = vector.shape_cast %123 : vector<1x1x64xf32> to vector<1x64xf32>
    %125 = vector.broadcast %124 : vector<1x64xf32> to vector<8x64xf32>
    %126 = arith.addf %122, %125 : vector<8x64xf32>
    %cst_56 = arith.constant 0.000000e+00 : f32
    %127 = vector.broadcast %cst_56 : f32 to vector<8x64xf32>
    %128 = arith.maximumf %126, %127 : vector<8x64xf32>
    %129 = arith.truncf %128 : vector<8x64xf32> to vector<8x64xbf16>
    %c0_57 = arith.constant 0 : index
    %c0_58 = arith.constant 0 : index
    %c0_59 = arith.constant 0 : index
    %130 = vector.load %arg9[%c0_57, %c0_58, %c0_59] : memref<2x64x32xbf16, #tpu.memory_space<vmem>>, vector<1x64x32xbf16>
    %131 = vector.shape_cast %130 : vector<1x64x32xbf16> to vector<64x32xbf16>
    %cst_60 = arith.constant dense<0.000000e+00> : vector<8x32xf32>
    %132 = tpu.matmul %129, %131, %cst_60 {dimension_numbers = #tpu.dot_dimension_numbers<[1], [0], [0], [1], [0, 0, 1, 1], [], []>} : vector<8x64xbf16>, vector<64x32xbf16>, vector<8x32xf32> -> vector<8x32xf32>
    %c0_61 = arith.constant 0 : index
    %c0_62 = arith.constant 0 : index
    %c0_63 = arith.constant 0 : index
    %133 = vector.load %arg10[%c0_61, %c0_62, %c0_63] : memref<2x1x32xf32, #tpu.memory_space<vmem>>, vector<1x1x32xf32>
    %134 = vector.shape_cast %133 : vector<1x1x32xf32> to vector<1x32xf32>
    %135 = vector.broadcast %134 : vector<1x32xf32> to vector<8x32xf32>
    %136 = arith.addf %132, %135 : vector<8x32xf32>
    %137 = arith.addf %118, %136 : vector<8x32xf32>
    %c0_64 = arith.constant 0 : index
    %c0_65 = arith.constant 0 : index
    %c0_66 = arith.constant 0 : index
    %138 = vector.load %arg13[%c0_64, %c0_65, %c0_66] : memref<2x1x32xf32, #tpu.memory_space<vmem>>, vector<1x1x32xf32>
    %139 = vector.shape_cast %138 : vector<1x1x32xf32> to vector<1x32xf32>
    %c0_67 = arith.constant 0 : index
    %c0_68 = arith.constant 0 : index
    %c0_69 = arith.constant 0 : index
    %140 = vector.load %arg14[%c0_67, %c0_68, %c0_69] : memref<2x1x32xf32, #tpu.memory_space<vmem>>, vector<1x1x32xf32>
    %141 = vector.shape_cast %140 : vector<1x1x32xf32> to vector<1x32xf32>
    %cst_70 = arith.constant dense<0.000000e+00> : vector<8xf32>
    %142 = vector.multi_reduction <add>, %137, %cst_70 [1] : vector<8x32xf32> to vector<8xf32>
    %143 = vector.shape_cast %142 : vector<8xf32> to vector<8x1xf32>
    %cst_71 = arith.constant 3.200000e+01 : f32
    %144 = vector.broadcast %cst_71 : f32 to vector<8x1xf32>
    %145 = arith.divf %143, %144 : vector<8x1xf32>
    %146 = vector.broadcast %145 : vector<8x1xf32> to vector<8x32xf32>
    %147 = arith.subf %137, %146 : vector<8x32xf32>
    %148 = arith.mulf %147, %147 : vector<8x32xf32>
    %cst_72 = arith.constant dense<0.000000e+00> : vector<8xf32>
    %149 = vector.multi_reduction <add>, %148, %cst_72 [1] : vector<8x32xf32> to vector<8xf32>
    %150 = vector.shape_cast %149 : vector<8xf32> to vector<8x1xf32>
    %cst_73 = arith.constant 3.200000e+01 : f32
    %151 = vector.broadcast %cst_73 : f32 to vector<8x1xf32>
    %152 = arith.divf %150, %151 : vector<8x1xf32>
    %153 = vector.broadcast %145 : vector<8x1xf32> to vector<8x32xf32>
    %154 = arith.subf %137, %153 : vector<8x32xf32>
    %cst_74 = arith.constant 9.99999974E-6 : f32
    %155 = vector.broadcast %cst_74 : f32 to vector<8x1xf32>
    %156 = arith.addf %152, %155 : vector<8x1xf32>
    %157 = math.rsqrt %156 : vector<8x1xf32>
    %158 = vector.broadcast %157 : vector<8x1xf32> to vector<8x32xf32>
    %159 = arith.mulf %154, %158 : vector<8x32xf32>
    %160 = vector.broadcast %139 : vector<1x32xf32> to vector<8x32xf32>
    %161 = arith.mulf %159, %160 : vector<8x32xf32>
    %162 = vector.broadcast %141 : vector<1x32xf32> to vector<8x32xf32>
    %163 = arith.addf %161, %162 : vector<8x32xf32>
    %164 = arith.truncf %163 : vector<8x32xf32> to vector<8x32xbf16>
    %c1 = arith.constant 1 : index
    %c0_75 = arith.constant 0 : index
    %c0_76 = arith.constant 0 : index
    %165 = vector.load %arg3[%c1, %c0_75, %c0_76] : memref<2x32x96xbf16, #tpu.memory_space<vmem>>, vector<1x32x96xbf16>
    %166 = vector.shape_cast %165 : vector<1x32x96xbf16> to vector<32x96xbf16>
    %cst_77 = arith.constant dense<0.000000e+00> : vector<8x96xf32>
    %167 = tpu.matmul %164, %166, %cst_77 {dimension_numbers = #tpu.dot_dimension_numbers<[1], [0], [0], [1], [0, 0, 1, 1], [], []>} : vector<8x32xbf16>, vector<32x96xbf16>, vector<8x96xf32> -> vector<8x96xf32>
    %c1_78 = arith.constant 1 : index
    %c0_79 = arith.constant 0 : index
    %c0_80 = arith.constant 0 : index
    %168 = vector.load %arg4[%c1_78, %c0_79, %c0_80] : memref<2x1x96xf32, #tpu.memory_space<vmem>>, vector<1x1x96xf32>
    %169 = vector.shape_cast %168 : vector<1x1x96xf32> to vector<1x96xf32>
    %170 = vector.broadcast %169 : vector<1x96xf32> to vector<8x96xf32>
    %171 = arith.addf %167, %170 : vector<8x96xf32>
    %172 = vector.extract_strided_slice %171 {offsets = [0, 0], sizes = [8, 8], strides = [1, 1]} : vector<8x96xf32> to vector<8x8xf32>
    %173 = vector.extract_strided_slice %171 {offsets = [0, 32], sizes = [8, 8], strides = [1, 1]} : vector<8x96xf32> to vector<8x8xf32>
    %174 = vector.extract_strided_slice %171 {offsets = [0, 64], sizes = [8, 8], strides = [1, 1]} : vector<8x96xf32> to vector<8x8xf32>
    %cst_81 = arith.constant dense<0.000000e+00> : vector<8x8xf32>
    %175 = tpu.matmul %172, %173, %cst_81 {dimension_numbers = #tpu.dot_dimension_numbers<[1], [1], [0], [0], [0, 0, 1, 0], [], []>} : vector<8x8xf32>, vector<8x8xf32>, vector<8x8xf32> -> vector<8x8xf32>
    %cst_82 = arith.constant 0.353553385 : f32
    %176 = vector.broadcast %cst_82 : f32 to vector<8x8xf32>
    %177 = arith.mulf %175, %176 : vector<8x8xf32>
    %cst_83 = arith.constant dense<0xFF800000> : vector<8xf32>
    %178 = vector.multi_reduction <maximumf>, %177, %cst_83 [1] : vector<8x8xf32> to vector<8xf32>
    %179 = vector.shape_cast %178 : vector<8xf32> to vector<8x1xf32>
    %180 = vector.broadcast %179 : vector<8x1xf32> to vector<8x8xf32>
    %181 = arith.subf %177, %180 : vector<8x8xf32>
    %182 = math.exp %181 : vector<8x8xf32>
    %cst_84 = arith.constant dense<0.000000e+00> : vector<8xf32>
    %183 = vector.multi_reduction <add>, %182, %cst_84 [1] : vector<8x8xf32> to vector<8xf32>
    %184 = vector.shape_cast %183 : vector<8xf32> to vector<8x1xf32>
    %185 = tpu.reciprocal %184 {approx = true} : vector<8x1xf32> -> vector<8x1xf32>
    %186 = vector.broadcast %185 : vector<8x1xf32> to vector<8x8xf32>
    %187 = arith.mulf %182, %186 : vector<8x8xf32>
    %cst_85 = arith.constant dense<0.000000e+00> : vector<8x8xf32>
    %188 = tpu.matmul %187, %174, %cst_85 {dimension_numbers = #tpu.dot_dimension_numbers<[1], [0], [0], [1], [0, 0, 1, 1], [], []>} : vector<8x8xf32>, vector<8x8xf32>, vector<8x8xf32> -> vector<8x8xf32>
    %189 = vector.extract_strided_slice %171 {offsets = [0, 8], sizes = [8, 8], strides = [1, 1]} : vector<8x96xf32> to vector<8x8xf32>
    %190 = vector.extract_strided_slice %171 {offsets = [0, 40], sizes = [8, 8], strides = [1, 1]} : vector<8x96xf32> to vector<8x8xf32>
    %191 = vector.extract_strided_slice %171 {offsets = [0, 72], sizes = [8, 8], strides = [1, 1]} : vector<8x96xf32> to vector<8x8xf32>
    %cst_86 = arith.constant dense<0.000000e+00> : vector<8x8xf32>
    %192 = tpu.matmul %189, %190, %cst_86 {dimension_numbers = #tpu.dot_dimension_numbers<[1], [1], [0], [0], [0, 0, 1, 0], [], []>} : vector<8x8xf32>, vector<8x8xf32>, vector<8x8xf32> -> vector<8x8xf32>
    %cst_87 = arith.constant 0.353553385 : f32
    %193 = vector.broadcast %cst_87 : f32 to vector<8x8xf32>
    %194 = arith.mulf %192, %193 : vector<8x8xf32>
    %cst_88 = arith.constant dense<0xFF800000> : vector<8xf32>
    %195 = vector.multi_reduction <maximumf>, %194, %cst_88 [1] : vector<8x8xf32> to vector<8xf32>
    %196 = vector.shape_cast %195 : vector<8xf32> to vector<8x1xf32>
    %197 = vector.broadcast %196 : vector<8x1xf32> to vector<8x8xf32>
    %198 = arith.subf %194, %197 : vector<8x8xf32>
    %199 = math.exp %198 : vector<8x8xf32>
    %cst_89 = arith.constant dense<0.000000e+00> : vector<8xf32>
    %200 = vector.multi_reduction <add>, %199, %cst_89 [1] : vector<8x8xf32> to vector<8xf32>
    %201 = vector.shape_cast %200 : vector<8xf32> to vector<8x1xf32>
    %202 = tpu.reciprocal %201 {approx = true} : vector<8x1xf32> -> vector<8x1xf32>
    %203 = vector.broadcast %202 : vector<8x1xf32> to vector<8x8xf32>
    %204 = arith.mulf %199, %203 : vector<8x8xf32>
    %cst_90 = arith.constant dense<0.000000e+00> : vector<8x8xf32>
    %205 = tpu.matmul %204, %191, %cst_90 {dimension_numbers = #tpu.dot_dimension_numbers<[1], [0], [0], [1], [0, 0, 1, 1], [], []>} : vector<8x8xf32>, vector<8x8xf32>, vector<8x8xf32> -> vector<8x8xf32>
    %206 = vector.extract_strided_slice %171 {offsets = [0, 16], sizes = [8, 8], strides = [1, 1]} : vector<8x96xf32> to vector<8x8xf32>
    %207 = vector.extract_strided_slice %171 {offsets = [0, 48], sizes = [8, 8], strides = [1, 1]} : vector<8x96xf32> to vector<8x8xf32>
    %208 = vector.extract_strided_slice %171 {offsets = [0, 80], sizes = [8, 8], strides = [1, 1]} : vector<8x96xf32> to vector<8x8xf32>
    %cst_91 = arith.constant dense<0.000000e+00> : vector<8x8xf32>
    %209 = tpu.matmul %206, %207, %cst_91 {dimension_numbers = #tpu.dot_dimension_numbers<[1], [1], [0], [0], [0, 0, 1, 0], [], []>} : vector<8x8xf32>, vector<8x8xf32>, vector<8x8xf32> -> vector<8x8xf32>
    %cst_92 = arith.constant 0.353553385 : f32
    %210 = vector.broadcast %cst_92 : f32 to vector<8x8xf32>
    %211 = arith.mulf %209, %210 : vector<8x8xf32>
    %cst_93 = arith.constant dense<0xFF800000> : vector<8xf32>
    %212 = vector.multi_reduction <maximumf>, %211, %cst_93 [1] : vector<8x8xf32> to vector<8xf32>
    %213 = vector.shape_cast %212 : vector<8xf32> to vector<8x1xf32>
    %214 = vector.broadcast %213 : vector<8x1xf32> to vector<8x8xf32>
    %215 = arith.subf %211, %214 : vector<8x8xf32>
    %216 = math.exp %215 : vector<8x8xf32>
    %cst_94 = arith.constant dense<0.000000e+00> : vector<8xf32>
    %217 = vector.multi_reduction <add>, %216, %cst_94 [1] : vector<8x8xf32> to vector<8xf32>
    %218 = vector.shape_cast %217 : vector<8xf32> to vector<8x1xf32>
    %219 = tpu.reciprocal %218 {approx = true} : vector<8x1xf32> -> vector<8x1xf32>
    %220 = vector.broadcast %219 : vector<8x1xf32> to vector<8x8xf32>
    %221 = arith.mulf %216, %220 : vector<8x8xf32>
    %cst_95 = arith.constant dense<0.000000e+00> : vector<8x8xf32>
    %222 = tpu.matmul %221, %208, %cst_95 {dimension_numbers = #tpu.dot_dimension_numbers<[1], [0], [0], [1], [0, 0, 1, 1], [], []>} : vector<8x8xf32>, vector<8x8xf32>, vector<8x8xf32> -> vector<8x8xf32>
    %223 = vector.extract_strided_slice %171 {offsets = [0, 24], sizes = [8, 8], strides = [1, 1]} : vector<8x96xf32> to vector<8x8xf32>
    %224 = vector.extract_strided_slice %171 {offsets = [0, 56], sizes = [8, 8], strides = [1, 1]} : vector<8x96xf32> to vector<8x8xf32>
    %225 = vector.extract_strided_slice %171 {offsets = [0, 88], sizes = [8, 8], strides = [1, 1]} : vector<8x96xf32> to vector<8x8xf32>
    %cst_96 = arith.constant dense<0.000000e+00> : vector<8x8xf32>
    %226 = tpu.matmul %223, %224, %cst_96 {dimension_numbers = #tpu.dot_dimension_numbers<[1], [1], [0], [0], [0, 0, 1, 0], [], []>} : vector<8x8xf32>, vector<8x8xf32>, vector<8x8xf32> -> vector<8x8xf32>
    %cst_97 = arith.constant 0.353553385 : f32
    %227 = vector.broadcast %cst_97 : f32 to vector<8x8xf32>
    %228 = arith.mulf %226, %227 : vector<8x8xf32>
    %cst_98 = arith.constant dense<0xFF800000> : vector<8xf32>
    %229 = vector.multi_reduction <maximumf>, %228, %cst_98 [1] : vector<8x8xf32> to vector<8xf32>
    %230 = vector.shape_cast %229 : vector<8xf32> to vector<8x1xf32>
    %231 = vector.broadcast %230 : vector<8x1xf32> to vector<8x8xf32>
    %232 = arith.subf %228, %231 : vector<8x8xf32>
    %233 = math.exp %232 : vector<8x8xf32>
    %cst_99 = arith.constant dense<0.000000e+00> : vector<8xf32>
    %234 = vector.multi_reduction <add>, %233, %cst_99 [1] : vector<8x8xf32> to vector<8xf32>
    %235 = vector.shape_cast %234 : vector<8xf32> to vector<8x1xf32>
    %236 = tpu.reciprocal %235 {approx = true} : vector<8x1xf32> -> vector<8x1xf32>
    %237 = vector.broadcast %236 : vector<8x1xf32> to vector<8x8xf32>
    %238 = arith.mulf %233, %237 : vector<8x8xf32>
    %cst_100 = arith.constant dense<0.000000e+00> : vector<8x8xf32>
    %239 = tpu.matmul %238, %225, %cst_100 {dimension_numbers = #tpu.dot_dimension_numbers<[1], [0], [0], [1], [0, 0, 1, 1], [], []>} : vector<8x8xf32>, vector<8x8xf32>, vector<8x8xf32> -> vector<8x8xf32>
    %240 = tpu.concatenate %188, %205, %222, %239 in 1 : vector<8x8xf32>, vector<8x8xf32>, vector<8x8xf32>, vector<8x8xf32> -> vector<8x32xf32>
    %241 = arith.truncf %240 : vector<8x32xf32> to vector<8x32xbf16>
    %c1_101 = arith.constant 1 : index
    %c0_102 = arith.constant 0 : index
    %c0_103 = arith.constant 0 : index
    %242 = vector.load %arg5[%c1_101, %c0_102, %c0_103] : memref<2x32x32xbf16, #tpu.memory_space<vmem>>, vector<1x32x32xbf16>
    %243 = vector.shape_cast %242 : vector<1x32x32xbf16> to vector<32x32xbf16>
    %cst_104 = arith.constant dense<0.000000e+00> : vector<8x32xf32>
    %244 = tpu.matmul %241, %243, %cst_104 {dimension_numbers = #tpu.dot_dimension_numbers<[1], [0], [0], [1], [0, 0, 1, 1], [], []>} : vector<8x32xbf16>, vector<32x32xbf16>, vector<8x32xf32> -> vector<8x32xf32>
    %c1_105 = arith.constant 1 : index
    %c0_106 = arith.constant 0 : index
    %c0_107 = arith.constant 0 : index
    %245 = vector.load %arg6[%c1_105, %c0_106, %c0_107] : memref<2x1x32xf32, #tpu.memory_space<vmem>>, vector<1x1x32xf32>
    %246 = vector.shape_cast %245 : vector<1x1x32xf32> to vector<1x32xf32>
    %247 = vector.broadcast %246 : vector<1x32xf32> to vector<8x32xf32>
    %248 = arith.addf %244, %247 : vector<8x32xf32>
    %249 = arith.addf %163, %248 : vector<8x32xf32>
    %c1_108 = arith.constant 1 : index
    %c0_109 = arith.constant 0 : index
    %c0_110 = arith.constant 0 : index
    %250 = vector.load %arg11[%c1_108, %c0_109, %c0_110] : memref<2x1x32xf32, #tpu.memory_space<vmem>>, vector<1x1x32xf32>
    %251 = vector.shape_cast %250 : vector<1x1x32xf32> to vector<1x32xf32>
    %c1_111 = arith.constant 1 : index
    %c0_112 = arith.constant 0 : index
    %c0_113 = arith.constant 0 : index
    %252 = vector.load %arg12[%c1_111, %c0_112, %c0_113] : memref<2x1x32xf32, #tpu.memory_space<vmem>>, vector<1x1x32xf32>
    %253 = vector.shape_cast %252 : vector<1x1x32xf32> to vector<1x32xf32>
    %cst_114 = arith.constant dense<0.000000e+00> : vector<8xf32>
    %254 = vector.multi_reduction <add>, %249, %cst_114 [1] : vector<8x32xf32> to vector<8xf32>
    %255 = vector.shape_cast %254 : vector<8xf32> to vector<8x1xf32>
    %cst_115 = arith.constant 3.200000e+01 : f32
    %256 = vector.broadcast %cst_115 : f32 to vector<8x1xf32>
    %257 = arith.divf %255, %256 : vector<8x1xf32>
    %258 = vector.broadcast %257 : vector<8x1xf32> to vector<8x32xf32>
    %259 = arith.subf %249, %258 : vector<8x32xf32>
    %260 = arith.mulf %259, %259 : vector<8x32xf32>
    %cst_116 = arith.constant dense<0.000000e+00> : vector<8xf32>
    %261 = vector.multi_reduction <add>, %260, %cst_116 [1] : vector<8x32xf32> to vector<8xf32>
    %262 = vector.shape_cast %261 : vector<8xf32> to vector<8x1xf32>
    %cst_117 = arith.constant 3.200000e+01 : f32
    %263 = vector.broadcast %cst_117 : f32 to vector<8x1xf32>
    %264 = arith.divf %262, %263 : vector<8x1xf32>
    %265 = vector.broadcast %257 : vector<8x1xf32> to vector<8x32xf32>
    %266 = arith.subf %249, %265 : vector<8x32xf32>
    %cst_118 = arith.constant 9.99999974E-6 : f32
    %267 = vector.broadcast %cst_118 : f32 to vector<8x1xf32>
    %268 = arith.addf %264, %267 : vector<8x1xf32>
    %269 = math.rsqrt %268 : vector<8x1xf32>
    %270 = vector.broadcast %269 : vector<8x1xf32> to vector<8x32xf32>
    %271 = arith.mulf %266, %270 : vector<8x32xf32>
    %272 = vector.broadcast %251 : vector<1x32xf32> to vector<8x32xf32>
    %273 = arith.mulf %271, %272 : vector<8x32xf32>
    %274 = vector.broadcast %253 : vector<1x32xf32> to vector<8x32xf32>
    %275 = arith.addf %273, %274 : vector<8x32xf32>
    %276 = arith.truncf %275 : vector<8x32xf32> to vector<8x32xbf16>
    %c1_119 = arith.constant 1 : index
    %c0_120 = arith.constant 0 : index
    %c0_121 = arith.constant 0 : index
    %277 = vector.load %arg7[%c1_119, %c0_120, %c0_121] : memref<2x32x64xbf16, #tpu.memory_space<vmem>>, vector<1x32x64xbf16>
    %278 = vector.shape_cast %277 : vector<1x32x64xbf16> to vector<32x64xbf16>
    %cst_122 = arith.constant dense<0.000000e+00> : vector<8x64xf32>
    %279 = tpu.matmul %276, %278, %cst_122 {dimension_numbers = #tpu.dot_dimension_numbers<[1], [0], [0], [1], [0, 0, 1, 1], [], []>} : vector<8x32xbf16>, vector<32x64xbf16>, vector<8x64xf32> -> vector<8x64xf32>
    %c1_123 = arith.constant 1 : index
    %c0_124 = arith.constant 0 : index
    %c0_125 = arith.constant 0 : index
    %280 = vector.load %arg8[%c1_123, %c0_124, %c0_125] : memref<2x1x64xf32, #tpu.memory_space<vmem>>, vector<1x1x64xf32>
    %281 = vector.shape_cast %280 : vector<1x1x64xf32> to vector<1x64xf32>
    %282 = vector.broadcast %281 : vector<1x64xf32> to vector<8x64xf32>
    %283 = arith.addf %279, %282 : vector<8x64xf32>
    %cst_126 = arith.constant 0.000000e+00 : f32
    %284 = vector.broadcast %cst_126 : f32 to vector<8x64xf32>
    %285 = arith.maximumf %283, %284 : vector<8x64xf32>
    %286 = arith.truncf %285 : vector<8x64xf32> to vector<8x64xbf16>
    %c1_127 = arith.constant 1 : index
    %c0_128 = arith.constant 0 : index
    %c0_129 = arith.constant 0 : index
    %287 = vector.load %arg9[%c1_127, %c0_128, %c0_129] : memref<2x64x32xbf16, #tpu.memory_space<vmem>>, vector<1x64x32xbf16>
    %288 = vector.shape_cast %287 : vector<1x64x32xbf16> to vector<64x32xbf16>
    %cst_130 = arith.constant dense<0.000000e+00> : vector<8x32xf32>
    %289 = tpu.matmul %286, %288, %cst_130 {dimension_numbers = #tpu.dot_dimension_numbers<[1], [0], [0], [1], [0, 0, 1, 1], [], []>} : vector<8x64xbf16>, vector<64x32xbf16>, vector<8x32xf32> -> vector<8x32xf32>
    %c1_131 = arith.constant 1 : index
    %c0_132 = arith.constant 0 : index
    %c0_133 = arith.constant 0 : index
    %290 = vector.load %arg10[%c1_131, %c0_132, %c0_133] : memref<2x1x32xf32, #tpu.memory_space<vmem>>, vector<1x1x32xf32>
    %291 = vector.shape_cast %290 : vector<1x1x32xf32> to vector<1x32xf32>
    %292 = vector.broadcast %291 : vector<1x32xf32> to vector<8x32xf32>
    %293 = arith.addf %289, %292 : vector<8x32xf32>
    %294 = arith.addf %275, %293 : vector<8x32xf32>
    %c1_134 = arith.constant 1 : index
    %c0_135 = arith.constant 0 : index
    %c0_136 = arith.constant 0 : index
    %295 = vector.load %arg13[%c1_134, %c0_135, %c0_136] : memref<2x1x32xf32, #tpu.memory_space<vmem>>, vector<1x1x32xf32>
    %296 = vector.shape_cast %295 : vector<1x1x32xf32> to vector<1x32xf32>
    %c1_137 = arith.constant 1 : index
    %c0_138 = arith.constant 0 : index
    %c0_139 = arith.constant 0 : index
    %297 = vector.load %arg14[%c1_137, %c0_138, %c0_139] : memref<2x1x32xf32, #tpu.memory_space<vmem>>, vector<1x1x32xf32>
    %298 = vector.shape_cast %297 : vector<1x1x32xf32> to vector<1x32xf32>
    %cst_140 = arith.constant dense<0.000000e+00> : vector<8xf32>
    %299 = vector.multi_reduction <add>, %294, %cst_140 [1] : vector<8x32xf32> to vector<8xf32>
    %300 = vector.shape_cast %299 : vector<8xf32> to vector<8x1xf32>
    %cst_141 = arith.constant 3.200000e+01 : f32
    %301 = vector.broadcast %cst_141 : f32 to vector<8x1xf32>
    %302 = arith.divf %300, %301 : vector<8x1xf32>
    %303 = vector.broadcast %302 : vector<8x1xf32> to vector<8x32xf32>
    %304 = arith.subf %294, %303 : vector<8x32xf32>
    %305 = arith.mulf %304, %304 : vector<8x32xf32>
    %cst_142 = arith.constant dense<0.000000e+00> : vector<8xf32>
    %306 = vector.multi_reduction <add>, %305, %cst_142 [1] : vector<8x32xf32> to vector<8xf32>
    %307 = vector.shape_cast %306 : vector<8xf32> to vector<8x1xf32>
    %cst_143 = arith.constant 3.200000e+01 : f32
    %308 = vector.broadcast %cst_143 : f32 to vector<8x1xf32>
    %309 = arith.divf %307, %308 : vector<8x1xf32>
    %310 = vector.broadcast %302 : vector<8x1xf32> to vector<8x32xf32>
    %311 = arith.subf %294, %310 : vector<8x32xf32>
    %cst_144 = arith.constant 9.99999974E-6 : f32
    %312 = vector.broadcast %cst_144 : f32 to vector<8x1xf32>
    %313 = arith.addf %309, %312 : vector<8x1xf32>
    %314 = math.rsqrt %313 : vector<8x1xf32>
    %315 = vector.broadcast %314 : vector<8x1xf32> to vector<8x32xf32>
    %316 = arith.mulf %311, %315 : vector<8x32xf32>
    %317 = vector.broadcast %296 : vector<1x32xf32> to vector<8x32xf32>
    %318 = arith.mulf %316, %317 : vector<8x32xf32>
    %319 = vector.broadcast %298 : vector<1x32xf32> to vector<8x32xf32>
    %320 = arith.addf %318, %319 : vector<8x32xf32>
    %cst_145 = arith.constant dense<0.000000e+00> : vector<32xf32>
    %321 = vector.multi_reduction <add>, %320, %cst_145 [0] : vector<8x32xf32> to vector<32xf32>
    %322 = vector.shape_cast %321 : vector<32xf32> to vector<1x32xf32>
    %cst_146 = arith.constant 8.000000e+00 : f32
    %323 = vector.broadcast %cst_146 : f32 to vector<1x32xf32>
    %324 = arith.divf %322, %323 : vector<1x32xf32>
    %325 = arith.truncf %324 : vector<1x32xf32> to vector<1x32xbf16>
    %c0_147 = arith.constant 0 : index
    %c0_148 = arith.constant 0 : index
    %326 = vector.load %arg15[%c0_147, %c0_148] : memref<32x4xbf16, #tpu.memory_space<vmem>>, vector<32x4xbf16>
    %cst_149 = arith.constant dense<0.000000e+00> : vector<1x4xf32>
    %327 = tpu.matmul %325, %326, %cst_149 {dimension_numbers = #tpu.dot_dimension_numbers<[1], [0], [0], [1], [0, 0, 1, 1], [], []>} : vector<1x32xbf16>, vector<32x4xbf16>, vector<1x4xf32> -> vector<1x4xf32>
    %c0_150 = arith.constant 0 : index
    %c0_151 = arith.constant 0 : index
    %328 = vector.load %arg16[%c0_150, %c0_151] : memref<1x4xf32, #tpu.memory_space<vmem>>, vector<1x4xf32>
    %329 = arith.addf %327, %328 : vector<1x4xf32>
    %cst_152 = arith.constant 0.000000e+00 : f32
    %330 = vector.broadcast %cst_152 : f32 to vector<1x4xf32>
    %331 = arith.subf %330, %329 : vector<1x4xf32>
    %332 = math.exp %331 : vector<1x4xf32>
    %cst_153 = arith.constant 1.000000e+00 : f32
    %333 = vector.broadcast %cst_153 : f32 to vector<1x4xf32>
    %334 = arith.addf %333, %332 : vector<1x4xf32>
    %cst_154 = arith.constant 1.000000e+00 : f32
    %335 = vector.broadcast %cst_154 : f32 to vector<1x4xf32>
    %336 = arith.divf %335, %334 : vector<1x4xf32>
    %c0_155 = arith.constant 0 : index
    %c0_156 = arith.constant 0 : index
    %c0_157 = arith.constant 0 : index
    %337 = vector.load %arg17[%c0_155, %c0_156, %c0_157] : memref<1x1x4xf32, #tpu.memory_space<vmem>>, vector<1x1x4xf32>
    %338 = vector.shape_cast %337 : vector<1x1x4xf32> to vector<1x4xf32>
    %339 = vector.shape_cast %336 : vector<1x4xf32> to vector<1x1x4xf32>
    tpu.vector_store %arg17[%c0_155, %c0_156, %c0_157], %339 {strides = array<i32>} : memref<1x1x4xf32, #tpu.memory_space<vmem>>, vector<1x1x4xf32>,
    return
  }
  func.func @transform_0(%arg0: i32) -> (i32, i32, i32) {
    %c0_i32 = arith.constant 0 : i32
    %c0_i32_0 = arith.constant 0 : i32
    %c0_i32_1 = arith.constant 0 : i32
    return %arg0, %c0_i32, %c0_i32_0 : i32, i32, i32
  }
  func.func @transform_1(%arg0: i32) -> (i32, i32) {
    %c0_i32 = arith.constant 0 : i32
    %c0_i32_0 = arith.constant 0 : i32
    %c0_i32_1 = arith.constant 0 : i32
    return %c0_i32, %c0_i32_0 : i32, i32
  }
  func.func @transform_2(%arg0: i32) -> (i32, i32, i32) {
    %c0_i32 = arith.constant 0 : i32
    %c0_i32_0 = arith.constant 0 : i32
    %c0_i32_1 = arith.constant 0 : i32
    %c0_i32_2 = arith.constant 0 : i32
    return %c0_i32, %c0_i32_0, %c0_i32_1 : i32, i32, i32
  }
  func.func @transform_3(%arg0: i32) -> (i32, i32, i32) {
    %c0_i32 = arith.constant 0 : i32
    %c0_i32_0 = arith.constant 0 : i32
    %c0_i32_1 = arith.constant 0 : i32
    %c0_i32_2 = arith.constant 0 : i32
    return %c0_i32, %c0_i32_0, %c0_i32_1 : i32, i32, i32
  }
  func.func @transform_4(%arg0: i32) -> (i32, i32, i32) {
    %c0_i32 = arith.constant 0 : i32
    %c0_i32_0 = arith.constant 0 : i32
    %c0_i32_1 = arith.constant 0 : i32
    %c0_i32_2 = arith.constant 0 : i32
    return %c0_i32, %c0_i32_0, %c0_i32_1 : i32, i32, i32
  }
  func.func @transform_5(%arg0: i32) -> (i32, i32, i32) {
    %c0_i32 = arith.constant 0 : i32
    %c0_i32_0 = arith.constant 0 : i32
    %c0_i32_1 = arith.constant 0 : i32
    %c0_i32_2 = arith.constant 0 : i32
    return %c0_i32, %c0_i32_0, %c0_i32_1 : i32, i32, i32
  }
  func.func @transform_6(%arg0: i32) -> (i32, i32, i32) {
    %c0_i32 = arith.constant 0 : i32
    %c0_i32_0 = arith.constant 0 : i32
    %c0_i32_1 = arith.constant 0 : i32
    %c0_i32_2 = arith.constant 0 : i32
    return %c0_i32, %c0_i32_0, %c0_i32_1 : i32, i32, i32
  }
  func.func @transform_7(%arg0: i32) -> (i32, i32, i32) {
    %c0_i32 = arith.constant 0 : i32
    %c0_i32_0 = arith.constant 0 : i32
    %c0_i32_1 = arith.constant 0 : i32
    %c0_i32_2 = arith.constant 0 : i32
    return %c0_i32, %c0_i32_0, %c0_i32_1 : i32, i32, i32
  }
  func.func @transform_8(%arg0: i32) -> (i32, i32, i32) {
    %c0_i32 = arith.constant 0 : i32
    %c0_i32_0 = arith.constant 0 : i32
    %c0_i32_1 = arith.constant 0 : i32
    %c0_i32_2 = arith.constant 0 : i32
    return %c0_i32, %c0_i32_0, %c0_i32_1 : i32, i32, i32
  }
  func.func @transform_9(%arg0: i32) -> (i32, i32, i32) {
    %c0_i32 = arith.constant 0 : i32
    %c0_i32_0 = arith.constant 0 : i32
    %c0_i32_1 = arith.constant 0 : i32
    %c0_i32_2 = arith.constant 0 : i32
    return %c0_i32, %c0_i32_0, %c0_i32_1 : i32, i32, i32
  }
  func.func @transform_10(%arg0: i32) -> (i32, i32, i32) {
    %c0_i32 = arith.constant 0 : i32
    %c0_i32_0 = arith.constant 0 : i32
    %c0_i32_1 = arith.constant 0 : i32
    %c0_i32_2 = arith.constant 0 : i32
    return %c0_i32, %c0_i32_0, %c0_i32_1 : i32, i32, i32
  }
  func.func @transform_11(%arg0: i32) -> (i32, i32, i32) {
    %c0_i32 = arith.constant 0 : i32
    %c0_i32_0 = arith.constant 0 : i32
    %c0_i32_1 = arith.constant 0 : i32
    %c0_i32_2 = arith.constant 0 : i32
    return %c0_i32, %c0_i32_0, %c0_i32_1 : i32, i32, i32
  }
  func.func @transform_12(%arg0: i32) -> (i32, i32, i32) {
    %c0_i32 = arith.constant 0 : i32
    %c0_i32_0 = arith.constant 0 : i32
    %c0_i32_1 = arith.constant 0 : i32
    %c0_i32_2 = arith.constant 0 : i32
    return %c0_i32, %c0_i32_0, %c0_i32_1 : i32, i32, i32
  }
  func.func @transform_13(%arg0: i32) -> (i32, i32, i32) {
    %c0_i32 = arith.constant 0 : i32
    %c0_i32_0 = arith.constant 0 : i32
    %c0_i32_1 = arith.constant 0 : i32
    %c0_i32_2 = arith.constant 0 : i32
    return %c0_i32, %c0_i32_0, %c0_i32_1 : i32, i32, i32
  }
  func.func @transform_14(%arg0: i32) -> (i32, i32) {
    %c0_i32 = arith.constant 0 : i32
    %c0_i32_0 = arith.constant 0 : i32
    %c0_i32_1 = arith.constant 0 : i32
    return %c0_i32, %c0_i32_0 : i32, i32
  }
  func.func @transform_15(%arg0: i32) -> (i32, i32) {
    %c0_i32 = arith.constant 0 : i32
    %c0_i32_0 = arith.constant 0 : i32
    %c0_i32_1 = arith.constant 0 : i32
    return %c0_i32, %c0_i32_0 : i32, i32
  }
  func.func @transform_16(%arg0: i32) -> (i32, i32, i32) {
    %c0_i32 = arith.constant 0 : i32
    %c0_i32_0 = arith.constant 0 : i32
    %c0_i32_1 = arith.constant 0 : i32
    return %arg0, %c0_i32, %c0_i32_0 : i32, i32, i32
  }
}

</mosaic_0001>

<bundles_post_ra>
// kernel: transformer_forward.1
= control target key start
LH: loop header
LB: loop body
LE: loop exit
PB: predicated region body
PF: predicated region fallthrough
CT: control target
= control target key end

     0   :  { %s2508_s0 = inlined_call_operand.vmem [shape: f32[2,8,32], index: 0, kind: input, shape index: {}]   ;;  %s2509_s1 = inlined_call_operand.vmem [shape: f32[8,32], index: 1, kind: input, shape index: {}]   ;;  %s2510_s2 = inlined_call_operand.vmem [shape: bf16[2,32,96], index: 2, kind: input, shape index: {}]   ;;  %s2511_s3 = inlined_call_operand.vmem [shape: f32[2,1,96], index: 3, kind: input, shape index: {}]   ;;  %s2512_s4 = inlined_call_operand.vmem [shape: bf16[2,32,32], index: 4, kind: input, shape index: {}]   ;;  %s2513_s5 = inlined_call_operand.vmem [shape: f32[2,1,32], index: 5, kind: input, shape index: {}]   ;;  %s2514_s6 = inlined_call_operand.vmem [shape: bf16[2,32,64], index: 6, kind: input, shape index: {}]   ;;  %s2515_s7 = inlined_call_operand.vmem [shape: f32[2,1,64], index: 7, kind: input, shape index: {}]   ;;  %s2516_s8 = inlined_call_operand.vmem [shape: bf16[2,64,32], index: 8, kind: input, shape index: {}]   ;;  %s2517_s9 = inlined_call_operand.vmem [shape: f32[2,1,32], index: 9, kind: input, shape index: {}]   ;;  %s2518_s10 = inlined_call_operand.vmem [shape: f32[2,1,32], index: 10, kind: input, shape index: {}]   ;;  %s2519_s11 = inlined_call_operand.vmem [shape: f32[2,1,32], index: 11, kind: input, shape index: {}]   ;;  %s2520_s12 = inlined_call_operand.vmem [shape: f32[2,1,32], index: 12, kind: input, shape index: {}]   ;;  %s2521_s13 = inlined_call_operand.vmem [shape: f32[2,1,32], index: 13, kind: input, shape index: {}]   ;;  %s2522_s14 = inlined_call_operand.vmem [shape: bf16[32,4], index: 14, kind: input, shape index: {}]   ;;  %s2523_s15 = inlined_call_operand.vmem [shape: f32[1,4], index: 15, kind: input, shape index: {}]   ;;  %s2524_s16 = inlined_call_operand.hbm [shape: f32[2,1,4], index: 16, kind: output, shape index: {}]  }
   0x1   :  { %2541 = sst [smem:[#allocation11_spill]] %s2508_s0 }
   0x2   :  { %2542 = sst [smem:[#allocation12_spill]] %s2509_s1 }
   0x3   :  { %21 = vsyncpa [#allocation3], 0 }
   0x4   :  { %23 = vsyncpa [#allocation3 + $0x1], 0  ;;  %s2163_s21 = smov 0   ;;  %s2165_s22 = smov 0  }
   0x5   :  { %s2167_s23 = smov 0   ;;  %s2169_s24 = smov 0  }
   0x6 LB: > { %2543 = sst [smem:[#allocation5_spill]] %s2048_s21  ;;  %s2184_s25 = sadd.s32 4294967295, %s2060_s24   ;;  %s2060_s24 = sphi %s2169_s24, %s2566_s24   ;;  %s2056_s23 = sphi %s2167_s23, %s2568_s23   ;;  %s2052_s22 = sphi %s2165_s22, %s2570_s22   ;;  %s2048_s21 = sphi %s2163_s21, %s2569_s21  }
   0x7   : > { %2544 = sst [smem:[#allocation6_spill]] %s2056_s23  ;;  %s1701_s26 = sadd.s32 4294967294, %s2060_s24  }
   0x8   : > { %2545 = sst [smem:[#allocation7_spill]] %s2060_s24  ;;  %s2188_s27 = sadd.s32 1, %s2060_s24  }
   0x9   : > { %2546 = sst [smem:[#allocation8_spill]] %s2188_s27  ;;  %s377_s28 = sadd.s32 1, %s2056_s23 }
   0xa   : > { %s374_s29 = ssub.s32 %s2060_s24, %s2188_s27  ;;  %p387_p0 = scmp.ne.s32.totalorder %s2056_s23, %s2052_s22 }
   0xb   : > { %p375_p1 = scmp.eq.s32.totalorder %s374_s29, 0  ;;  %p388_p2 = scmp.eq.s32.totalorder %s2184_s25, 1 }
   0xc   : > { %p393_p3 = scmp.ne.s32.totalorder %s2052_s22, %s2048_s21  ;;  %p394_p4 = scmp.eq.s32.totalorder %s1701_s26, 1 }
   0xd   : > { %s2199_s30 = scalar_select %p375_p1, %s2056_s23, %s377_s28  }
   0xe   : > { %p2201_p5 = por %p388_p2, %p387_p0  ;;  %p2205_p6 = por %p394_p4, %p393_p3 }
   0xf   : > { %2547 = sst [smem:[#allocation9_spill]] %s2199_s30  ;;  %p1704_p7 = scmp.ge.s32.totalorder %s2060_s24, 1 }
  0x10   : > { %s2549_s17 = scalar_select %p2205_p6, 1, 0 }
  0x11   : > { %p464_p8 = scmp.lt.s32.totalorder %s2060_s24, 3 }
  0x12   : > { %2550 = sst [smem:[#allocation10_spill]] %s2549_s17 }
  0x13   : > { %p465_p9 = pnand %p1704_p7, %p464_p8 }
  0x14   : > { %p512_p10 = scmp.lt.s32.totalorder (!%p465_p9), %s2184_s25, 1  ;;  %s2551_s1 = sld [smem:[#allocation12_spill]] (!%p465_p9) }
  0x15   : > { %468 = sbr.rel (%p465_p9) target bundleno = 4660 (0x1234), region = 84  ;;  %s2552_s21 = sld [smem:[#allocation11_spill]] (!%p465_p9) }
  0x16   : > { %s2062_s23 = smov (!%p465_p9), 64   ;;  %s2534_s27 = smov (!%p465_p9), 56  }
  0x17   : > { %s2540_s30 = smov (!%p465_p9), 88   ;;  %s2067_s17 = smov (!%p465_p9), 72  }
  0x18   : > { %s2539_s20 = smov (!%p465_p9), 80   ;;  %s2535_s26 = smov (!%p465_p9), 112  }
  0x19   : > { %s2531_s18 = smov (!%p465_p9), 8   ;;  %s2532_s19 = smov (!%p465_p9), 48  }
  0x1a   : > { %v1858_v0 = vld [vmem:[%s2510_s2 + $0x8] sm:$0xff]  ;;  %v1857_v1 = vld [vmem:[%s2510_s2] sm:$0xff]  ;;  %s513_s28 = scalar_select %p512_p10, %s2184_s25, 1  ;;  %vm542_vm0 = vcmask 261120   ;;  %vm562_vm1 = vcmask 64512   ;;  %vm836_vm2 = vcmask 130048  }
  0x1b   : > { %552 = vmatpush.bf16.msra.mxu0 %v1858_v0  ;;  %v519_v2 = vld [vmem:[%s2551_s1] sm:$0xff]  ;;  %vm838_vm3 = vcmask 195584   ;;  %vm992_vm8 = vcmask 523264  }
  0x1c   : > { %s1705_s29 = sshll.u32 %s513_s28, 3  ;;  %v1934_v7 = vld [vmem:[%s2511_s3] ss:$0 sm:$0xff]  ;;  %s2536_s28 = smov 104  }
  0x1d   : > { %s515_s24 = scalar_lea.vmem %s2552_s21, %s1705_s29  ;;  %s2063_s21 = smov 120  }
  0x1e   : > { %v517_v3 = vld [vmem:[%s515_s24] sm:$0xff]  ;;  %s2064_s24 = smov 96   ;;  %s2533_s29 = smov 40  }
  0x1f   : > { %553 = vmatpush.bf16.msra.mxu0 %v1857_v1  ;;  %v518_v4 = vmul.f32 5.656854, %v517_v3 }
  0x21   : > { %v2225_v5 = vadd.f32 %v519_v2, %v518_v4 }
  0x23   : > { %v521_v6 = vpack.c.bf16 %v2225_v5, %v2225_v5 }
  0x25   : > { %1714 = vmatmul.msk.bf16.vlgmr.msra.gmra.mxu0 %vm542_vm0, %v521_v6 }
  0xa2   : > { %v555_v8 = vpop.f32.mrf.mxu0 }
  0xa3   : > { %v2233_v9 = vadd.f32 %v1934_v7, %v555_v8  ;;  %v1860_v7 = vld [vmem:[%s2512_s4 + $0x8] sm:$0xff]  ;;  %v1859_v8 = vld [vmem:[%s2512_s4] sm:$0xff] }
  0xa5   : > { %599 = vrot.lane.b32.xlu2 %v2233_v9, %s2062_s23  ;;  %625 = vrot.lane.b32.xlu1 %v2233_v9, %s2063_s21 }
  0xa6   : > { %560 = vrot.lane.b32.xlu0 %v2233_v9, %s2064_s24 }
  0xaa   : > { %v557_v10 = vpop.f32.mrf.mxu0 }
  0xad   : > { %665 = vrot.lane.b32.xlu2 %v2233_v9, %s2534_s27  ;;  %s2557_s27 = smov 56  }
  0xae   : > { %627 = vrot.lane.b32.xlu0 %v2233_v9, %s2540_s30  ;;  %s2018_s30 = scalar_lea.hbm %s2524_s16, 2 }
  0xff   : > { %v600_v11 = vpop.permute.xlu2 %599 }
 0x100   : > { %620 = vmatpush.msra.mxu2 %v600_v11 }
 0x107   : > { %v666_v12 = vpop.permute.xlu2 %665 }
 0x108   : > { %686 = vmatpush.msrb.mxu2 %v666_v12 }
 0x117   : > { %v626_v15 = vpop.permute.xlu1 %625 }
 0x118   : > { %v561_v13 = vpop.permute.xlu0 %560 }
 0x119   : > { %1715 = vmatpush.xpose.msk.msrb.mxu0 %vm562_vm1, %v561_v13 }
 0x11c   : > { %1716 = vmatmul.msk.f32.vlgmr.msrb.gmra.mxu0 %vm562_vm1, %v2233_v9 }
 0x120   : > { %v628_v14 = vpop.permute.xlu0 %627 }
 0x121   : > { %1718 = vmatpush.xpose.msk.msra.mxu3 %vm562_vm1, %v628_v14 }
 0x124   : > { %1719 = vmatmul.msk.f32.vlgmr.msra.gmra.mxu3 %vm562_vm1, %v626_v15 }
 0x199   : > { %v584_v16 = vpop.f32.mrf.mxu0 }
 0x19a   : > { %v587_v17 = vmul.f32 0.35355338, %v584_v16  ;;  %v1935_v16 = vld [vmem:[%s2513_s5] ss:$0 sm:$0xff] }
 0x19c   : > { %v588_v18 = vsel %vm562_vm1, %v587_v17, -inf }
 0x19d   : > { %589 = vmax.xlane.f32.xlu1 %v588_v18 }
 0x1a7   : > { %v650_v19 = vpop.f32.mrf.mxu3 }
 0x1a8   : > { %v653_v20 = vmul.f32 0.35355338, %v650_v19 }
 0x1aa   : > { %v654_v21 = vsel %vm562_vm1, %v653_v20, -inf }
 0x1ab   : > { %655 = vmax.xlane.f32.xlu2 %v654_v21 }
 0x1b6   : > { %759 = vrot.lane.b32.xlu1 %v2233_v9, %s2067_s17 }
 0x1c3   : > { %693 = vrot.lane.b32.xlu2 %v2233_v9, %s2539_s20  ;;  %s510_s20 = sand.u32 1, %s2052_s22  }
 0x210   : > { %v590_v22 = vpop.xlane.xlu1 %589 }
 0x211   : > { %v591_v23 = vsub.f32 %v587_v17, %v590_v22  ;;  %v2076_v22 = vmov 32.0  }
 0x213   : > { %v592_v24 = vmul.f32 1.442695, %v591_v23 }
 0x215   : > { %1950 = vpow2.f32 %v592_v24 }
 0x21b   : > { %v1951_v25 = vpop.eup %1950 }
 0x21c   : > { %v594_v26 = vsel %vm562_vm1, %v1951_v25, 0.0 }
 0x21d   : > { %595 = vadd.xlane.f32.xlu2 %v594_v26 }
 0x21e   : > { %v656_v27 = vpop.xlane.xlu2 %655 }
 0x21f   : > { %v657_v28 = vsub.f32 %v653_v20, %v656_v27 }
 0x221   : > { %v658_v29 = vmul.f32 1.442695, %v657_v28 }
 0x223   : > { %1952 = vpow2.f32 %v658_v29 }
 0x226   : > { %v694_v30 = vpop.permute.xlu2 %693 }
 0x227   : > { %1721 = vmatpush.xpose.msk.msra.mxu1 %vm562_vm1, %v694_v30 }
 0x228   : > { %v760_v37 = vpop.permute.xlu1 %759 }
 0x229   : > { %v1953_v31 = vpop.eup %1952 }
 0x22a   : > { %v660_v32 = vsel %vm562_vm1, %v1953_v31, 0.0 }
 0x22b   : > { %661 = vadd.xlane.f32.xlu0 %v660_v32 }
 0x235   : > { %691 = vrot.lane.b32.xlu2 %v2233_v9, %s2535_s26  ;;  %s2561_s26 = smov 24  }
 0x23f   : > { %757 = vrot.lane.b32.xlu0 %v2233_v9, %s2536_s28  ;;  %s2562_s28 = smov 16  }
 0x290   : > { %v596_v33 = vpop.xlane.xlu2 %595 }
 0x291   : > { %1954 = vrcp.f32 %v596_v33  ;;  %v1862_v33 = vld [vmem:[%s2514_s6 + $0x8] sm:$0xff] }
 0x292   : > { %947 = vmatpush.bf16.msra.mxu0 %v1862_v33 }
 0x297   : > { %v1955_v34 = vpop.eup %1954 }
 0x298   : > { %v692_v35 = vpop.permute.xlu2 %691  ;;  %v598_v36 = vmul.f32 %v1955_v34, %v1951_v25  ;;  %v1861_v34 = vld [vmem:[%s2514_s6] sm:$0xff] }
 0x299   : > { %1722 = vmatmul.msk.f32.vlgmr.msra.gmra.mxu1 %vm562_vm1, %v692_v35  ;;  %948 = vmatpush.bf16.msra.mxu0 %v1861_v34  ;;  %v1866_v35 = vld [vmem:[%s2516_s8 + $0x18] sm:$0xff] }
 0x29a   : > { %1717 = vmatmul.msk.f32.vlgmr.msra.gmra.mxu2 %vm562_vm1, %v598_v36 }
 0x29b   : > { %1724 = vmatpush.xpose.msk.msra.mxu2 %vm562_vm1, %v760_v37 }
 0x29e   : > { %v662_v38 = vpop.xlane.xlu0 %661 }
 0x29f   : > { %1956 = vrcp.f32 %v662_v38  ;;  %v1865_v38 = vld [vmem:[%s2516_s8 + $0x10] sm:$0xff] }
 0x2a5   : > { %v1957_v39 = vpop.eup %1956 }
 0x2a6   : > { %v664_v40 = vmul.f32 %v1957_v39, %v1953_v31 }
 0x2a8   : > { %1720 = vmatmul.msk.f32.vlgmr.msrb.gmra.mxu2 %vm562_vm1, %v664_v40 }
 0x2a9   : > { %1000 = vmatpush.bf16.msrb.mxu2 %v1866_v35 }
 0x2ad   : > { %1001 = vmatpush.bf16.msrb.mxu2 %v1865_v38 }
 0x2b1   : > { %v758_v41 = vpop.permute.xlu0 %757 }
 0x2b2   : > { %1725 = vmatmul.msk.f32.vlgmr.msra.gmra.mxu2 %vm562_vm1, %v758_v41 }
 0x316   : > { %v716_v42 = vpop.f32.mrf.mxu1 }
 0x317   : > { %v719_v43 = vmul.f32 0.35355338, %v716_v42 }
 0x319   : > { %v720_v44 = vsel %vm562_vm1, %v719_v43, -inf }
 0x31a   : > { %721 = vmax.xlane.f32.xlu2 %v720_v44 }
 0x31d   : > { %v622_v45 = vpop.f32.mrf.mxu2 }
 0x32b   : > { %v688_v46 = vpop.f32.mrf.mxu2 }
 0x335   : > { %v782_v47 = vpop.f32.mrf.mxu2 }
 0x336   : > { %v785_v48 = vmul.f32 0.35355338, %v782_v47 }
 0x338   : > { %v786_v49 = vsel %vm562_vm1, %v785_v48, -inf }
 0x339   : > { %787 = vmax.xlane.f32.xlu1 %v786_v49 }
 0x352   : > { %797 = vrot.lane.b32.xlu1 %v2233_v9, %s2533_s29  ;;  %s2558_s29 = smov 40  }
 0x38d   : > { %v722_v50 = vpop.xlane.xlu2 %721 }
 0x38e   : > { %v723_v51 = vsub.f32 %v719_v43, %v722_v50 }
 0x390   : > { %v724_v52 = vmul.f32 1.442695, %v723_v51 }
 0x392   : > { %1958 = vpow2.f32 %v724_v52 }
 0x398   : > { %v1959_v53 = vpop.eup %1958 }
 0x399   : > { %v726_v54 = vsel %vm562_vm1, %v1959_v53, 0.0 }
 0x39a   : > { %727 = vadd.xlane.f32.xlu0 %v726_v54  ;;  %v1863_v54 = vld [vmem:[%s2516_s8] sm:$0xff] }
 0x3ac   : > { %v788_v55 = vpop.xlane.xlu1 %787 }
 0x3ad   : > { %v789_v56 = vsub.f32 %v785_v48, %v788_v55  ;;  %v1937_v48 = vld [vmem:[%s2519_s11] ss:$0 sm:$0xff] }
 0x3ae   : > { %824 = vrot.lane.b32.xlu0 %v688_v46, %s2531_s18  ;;  %s2538_s18 = smov 24   ;;  %v1936_v46 = vld [vmem:[%s2518_s10] ss:$0 sm:$0xff] }
 0x3af   : > { %v790_v57 = vmul.f32 1.442695, %v789_v56  ;;  %v1938_v55 = vld [vmem:[%s2515_s7] ss:$0 sm:$0xff] }
 0x3b1   : > { %1960 = vpow2.f32 %v790_v57 }
 0x3b7   : > { %v1961_v58 = vpop.eup %1960 }
 0x3b8   : > { %v792_v59 = vsel %vm562_vm1, %v1961_v58, 0.0 }
 0x3b9   : > { %793 = vadd.xlane.f32.xlu2 %v792_v59 }
 0x3c4   : > { %v798_v60 = vpop.permute.xlu1 %797 }
 0x3c5   : > { %818 = vmatpush.msrb.mxu1 %v798_v60 }
 0x3d1   : > { %731 = vrot.lane.b32.xlu2 %v2233_v9, %s2532_s19  ;;  %s2537_s19 = smov 16  }
 0x40d   : > { %v728_v61 = vpop.xlane.xlu0 %727 }
 0x40e   : > { %1962 = vrcp.f32 %v728_v61  ;;  %v1939_v61 = vld [vmem:[%s2517_s9] ss:$0 sm:$0xff] }
 0x414   : > { %v1963_v63 = vpop.eup %1962 }
 0x415   : > { %v730_v2 = vmul.f32 %v1963_v63, %v1959_v53  ;;  %v1864_v53 = vld [vmem:[%s2516_s8 + $0x8] sm:$0xff] }
 0x416   : > { %1002 = vmatpush.bf16.msrb.mxu2 %v1864_v53 }
 0x41a   : > { %1003 = vmatpush.bf16.msrb.mxu2 %v1863_v54 }
 0x420   : > { %v825_v9 = vpop.permute.xlu0 %824 }
 0x421   : > { %v835_v11 = vsel %vm562_vm1, %v622_v45, %v825_v9  ;;  %v1868_v9 = vld [vmem:[%s2510_s2 + $0x18] sm:$0xff] }
 0x422   : > { %1074 = vmatpush.bf16.msra.mxu1 %v1868_v9 }
 0x42c   : > { %v794_v62 = vpop.xlane.xlu2 %793 }
 0x42d   : > { %1964 = vrcp.f32 %v794_v62 }
 0x42e   : > { %1966 = vrcp.f32 %v2076_v22  ;;  %v1941_v22 = vld [vmem:[%s2521_s13] ss:$0 sm:$0xff] }
 0x433   : > { %v1965_v0 = vpop.eup %1964 }
 0x434   : > { %v732_v1 = vpop.permute.xlu2 %731  ;;  %v796_v3 = vmul.f32 %v1965_v0, %v1961_v58  ;;  %v1967_v23 = vpop.eup %1966 }
 0x435   : > { %752 = vmatpush.msrb.mxu3 %v732_v1  ;;  %v884_v24 = vmul.f32 32.0, %v1967_v23  ;;  %vm888_vm4 = vweird.f32 %v1967_v23 }
 0x436   : > { %1723 = vmatmul.msk.f32.vlgmr.msrb.gmra.mxu3 %vm562_vm1, %v730_v2  ;;  %1726 = vmatmul.msk.f32.vlgmr.msrb.gmra.mxu1 %vm562_vm1, %v796_v3 }
 0x437   : > { %870 = vmatpush.bf16.msra.mxu3 %v1860_v7  ;;  %v885_v25 = vsub.f32 1.0, %v884_v24 }
 0x439   : > { %v886_v26 = vmul.f32 %v1967_v23, %v885_v25 }
 0x43b   : > { %871 = vmatpush.bf16.msra.mxu3 %v1859_v8  ;;  %v887_v27 = vadd.f32 %v1967_v23, %v886_v26 }
 0x43d   : > { %v2296_v28 = vsel %vm888_vm4, %v1967_v23, %v887_v27  ;;  %v1942_v27 = vld [vmem:[%s2511_s3 + $0x1] ss:$0 sm:$0xff] }
 0x4b3   : > { %v820_v4 = vpop.f32.mrf.mxu1 }
 0x4b4   : > { %832 = vrot.lane.b32.xlu0 %v820_v4, %s2538_s18  ;;  %s2559_s18 = smov 48  }
 0x4b9   : > { %v754_v6 = vpop.f32.mrf.mxu3 }
 0x4ba   : > { %828 = vrot.lane.b32.xlu2 %v754_v6, %s2537_s19  ;;  %s2560_s19 = smov 8  }
 0x514   : > { %v829_v10 = vpop.permute.xlu2 %828 }
 0x515   : > { %v837_v12 = vsel %vm836_vm2, %v835_v11, %v829_v10  ;;  %v1867_v10 = vld [vmem:[%s2510_s2 + $0x10] sm:$0xff] }
 0x516   : > { %1075 = vmatpush.bf16.msra.mxu1 %v1867_v10 }
 0x526   : > { %v833_v13 = vpop.permute.xlu0 %832 }
 0x527   : > { %v839_v14 = vsel %vm838_vm3, %v837_v12, %v833_v13 }
 0x528   : > { %v840_v15 = vpack.c.bf16 %v839_v14, %v839_v14 }
 0x52a   : > { %1735 = vmatmul.msk.bf16.vlgmr.msra.gmra.mxu3 %vm542_vm0, %v840_v15 }
 0x5ad   : > { %v873_v17 = vpop.f32.mrf.mxu3 }
 0x5ae   : > { %v874_v18 = vadd.f32 %v1935_v16, %v873_v17 }
 0x5b0   : > { %v877_v19 = vadd.f32 %v874_v18, %v2225_v5 }
 0x5b2   : > { %v880_v20 = vsel %vm542_vm0, %v877_v19, 0.0 }
 0x5b3   : > { %881 = vadd.xlane.f32.xlu1 %v880_v20  ;;  %v1940_v20 = vld [vmem:[%s2520_s12] ss:$0 sm:$0xff] }
 0x5b5   : > { %v875_v21 = vpop.f32.mrf.mxu3 }
 0x626   : > { %v882_v29 = vpop.xlane.xlu1 %881 }
 0x627   : > { %v890_v30 = vmul.f32 %v2296_v28, %v882_v29 }
 0x629   : > { %v891_v31 = vsub.f32 %v877_v19, %v890_v30 }
 0x62b   : > { %v892_v32 = vmul.f32 %v891_v31, %v891_v31 }
 0x62d   : > { %v893_v5 = vsel %vm542_vm0, %v892_v32, 0.0 }
 0x62e   : > { %894 = vadd.xlane.f32.xlu2 %v893_v5 }
 0x6a1   : > { %v895_v36 = vpop.xlane.xlu2 %894 }
 0x6a2   : > { %v896_v37 = vmul.f32 %v895_v36, %v2296_v28 }
 0x6a4   : > { %v897_v39 = vadd.f32 1e-05, %v896_v37 }
 0x6a6   : > { %1968 = vrsqrt.f32 %v897_v39  ;;  %vm904_vm6 = vweird.f32 %v897_v39 }
 0x6ac   : > { %v1969_v40 = vpop.eup %1968 }
 0x6ad   : > { %v899_v41 = vmul.f32 %v1969_v40, %v897_v39  ;;  %vm905_vm5 = vweird.f32 %v1969_v40 }
 0x6ae   : > { %vm906_vm7 = vmor %vm904_vm6, %vm905_vm5  ;;  %vm1631_vm6 = vcmask 24576  }
 0x6af   : > { %v900_v42 = vmul.f32 %v1969_v40, %v899_v41 }
 0x6b1   : > { %v901_v43 = vmul.f32 0.5, %v900_v42 }
 0x6b3   : > { %v902_v44 = vsub.f32 1.5, %v901_v43 }
 0x6b5   : > { %v903_v45 = vmul.f32 %v1969_v40, %v902_v44 }
 0x6b7   : > { %v907_v47 = vsel %vm906_vm7, %v1969_v40, %v903_v45 }
 0x6b8   : > { %v908_v49 = vmul.f32 %v907_v47, %v891_v31 }
 0x6ba   : > { %v912_v50 = vmul.f32 %v1936_v46, %v908_v49 }
 0x6bc   : > { %v916_v51 = vadd.f32 %v1937_v48, %v912_v50 }
 0x6be   : > { %v917_v52 = vpack.c.bf16 %v916_v51, %v916_v51 }
 0x6c0   : > { %1744 = vmatmul.msk.bf16.vlgmr.msra.gmra.mxu0 %vm542_vm0, %v917_v52 }
 0x73d   : > { %v950_v56 = vpop.f32.mrf.mxu0 }
 0x73e   : > { %v951_v57 = vadd.f32 %v1938_v55, %v950_v56 }
 0x740   : > { %v954_v58 = vmax.f32 %v951_v57, 0.0 }
 0x742   : > { %v955_v59 = vpack.c.bf16 %v954_v58, %v954_v58 }
 0x744   : > { %1761 = vmatmul.msk.bf16.vlgmr.msrb.gmra.mxu2 %vm992_vm8, %v955_v59 }
 0x745   : > { %v952_v60 = vpop.f32.mrf.mxu0 }
 0x7c7   : > { %v1005_v62 = vpop.f32.mrf.mxu2 }
 0x7c8   : > { %v1006_v63 = vadd.f32 %v1939_v61, %v1005_v62 }
 0x7ca   : > { %v1009_v0 = vadd.f32 %v1006_v63, %v916_v51 }
 0x7cc   : > { %v1012_v1 = vsel %vm542_vm0, %v1009_v0, 0.0 }
 0x7cd   : > { %1013 = vadd.xlane.f32.xlu0 %v1012_v1 }
 0x7cf   : > { %v1007_v2 = vpop.f32.mrf.mxu2 }
 0x840   : > { %v1014_v3 = vpop.xlane.xlu0 %1013 }
 0x841   : > { %v1015_v4 = vmul.f32 %v1014_v3, %v2296_v28 }
 0x843   : > { %v1016_v6 = vsub.f32 %v1009_v0, %v1015_v4 }
 0x845   : > { %v1017_v7 = vmul.f32 %v1016_v6, %v1016_v6 }
 0x847   : > { %v1018_v8 = vsel %vm542_vm0, %v1017_v7, 0.0 }
 0x848   : > { %1019 = vadd.xlane.f32.xlu1 %v1018_v8 }
 0x8bb   : > { %v1020_v11 = vpop.xlane.xlu1 %1019 }
 0x8bc   : > { %v1021_v12 = vmul.f32 %v1020_v11, %v2296_v28 }
 0x8be   : > { %v1022_v13 = vadd.f32 1e-05, %v1021_v12 }
 0x8c0   : > { %1970 = vrsqrt.f32 %v1022_v13  ;;  %vm1029_vm10 = vweird.f32 %v1022_v13 }
 0x8c6   : > { %v1971_v14 = vpop.eup %1970 }
 0x8c7   : > { %v1024_v15 = vmul.f32 %v1971_v14, %v1022_v13  ;;  %vm1030_vm9 = vweird.f32 %v1971_v14 }
 0x8c8   : > { %vm1031_vm11 = vmor %vm1029_vm10, %vm1030_vm9 }
 0x8c9   : > { %v1025_v16 = vmul.f32 %v1971_v14, %v1024_v15 }
 0x8cb   : > { %v1026_v17 = vmul.f32 0.5, %v1025_v16 }
 0x8cd   : > { %v1027_v18 = vsub.f32 1.5, %v1026_v17 }
 0x8cf   : > { %v1028_v19 = vmul.f32 %v1971_v14, %v1027_v18 }
 0x8d1   : > { %v1032_v21 = vsel %vm1031_vm11, %v1971_v14, %v1028_v19 }
 0x8d2   : > { %v1033_v23 = vmul.f32 %v1032_v21, %v1016_v6 }
 0x8d4   : > { %v1037_v24 = vmul.f32 %v1940_v20, %v1033_v23 }
 0x8d6   : > { %v2349_v25 = vadd.f32 %v1941_v22, %v1037_v24 }
 0x8d8   : > { %v1042_v26 = vpack.c.bf16 %v2349_v25, %v2349_v25 }
 0x8da   : > { %1775 = vmatmul.msk.bf16.vlgmr.msra.gmra.mxu1 %vm542_vm0, %v1042_v26 }
 0x957   : > { %v1077_v29 = vpop.f32.mrf.mxu1 }
 0x958   : > { %v2357_v30 = vadd.f32 %v1942_v27, %v1077_v29  ;;  %v1870_v27 = vld [vmem:[%s2512_s4 + $0x18] sm:$0xff] }
 0x95a   : > { %1120 = vrot.lane.b32.xlu1 %v2357_v30, %s2062_s23  ;;  %1082 = vrot.lane.b32.xlu2 %v2357_v30, %s2064_s24  ;;  %s2553_s23 = smov 88   ;;  %s2555_s24 = smov 104  }
 0x95f   : > { %v1079_v31 = vpop.f32.mrf.mxu1 }
 0x962   : > { %1146 = vrot.lane.b32.xlu2 %v2357_v30, %s2063_s21  ;;  %s2554_s21 = smov 80  }
 0x96a   : > { %1280 = vrot.lane.b32.xlu2 %v2357_v30, %s2067_s17  ;;  %s2556_s17 = smov 112  }
 0x9b4   : > { %v1083_v32 = vpop.permute.xlu2 %1082 }
 0x9b5   : > { %1776 = vmatpush.xpose.msk.msrb.mxu3 %vm562_vm1, %v1083_v32 }
 0x9b8   : > { %1777 = vmatmul.msk.f32.vlgmr.msrb.gmra.mxu3 %vm562_vm1, %v2357_v30 }
 0x9bc   : > { %v1147_v39 = vpop.permute.xlu2 %1146 }
 0x9c4   : > { %v1281_v43 = vpop.permute.xlu2 %1280 }
 0x9cc   : > { %v1121_v5 = vpop.permute.xlu1 %1120 }
 0x9cd   : > { %1141 = vmatpush.msrb.mxu0 %v1121_v5 }
 0xa3b   : > { %v1105_v33 = vpop.f32.mrf.mxu3 }
 0xa3c   : > { %v1108_v34 = vmul.f32 0.35355338, %v1105_v33 }
 0xa3e   : > { %v1109_v35 = vsel %vm562_vm1, %v1108_v34, -inf }
 0xa3f   : > { %1110 = vmax.xlane.f32.xlu0 %v1109_v35 }
 0xa53   : > { %1148 = vrot.lane.b32.xlu0 %v2357_v30, %s2553_s23 }
 0xa5b   : > { %1214 = vrot.lane.b32.xlu0 %v2357_v30, %s2554_s21  ;;  %s1642_s21 = scalar_lea.hbm %s2524_s16, %s2184_s25  ;;  %s1634_s25 = scalar_lea.sflag [#allocation3], %s510_s20 }
 0xa63   : > { %1278 = vrot.lane.b32.xlu0 %v2357_v30, %s2555_s24  ;;  %s511_s24 = scalar_lea.vmem [#allocation2], %s510_s20 }
 0xab2   : > { %v1111_v36 = vpop.xlane.xlu0 %1110 }
 0xab3   : > { %v1112_v37 = vsub.f32 %v1108_v34, %v1111_v36 }
 0xab5   : > { %v1113_v38 = vmul.f32 1.442695, %v1112_v37  ;;  %v1943_v37 = vld [vmem:[%s2513_s5 + $0x1] ss:$0 sm:$0xff] }
 0xab7   : > { %1972 = vpow2.f32 %v1113_v38 }
 0xabd   : > { %v1973_v40 = vpop.eup %1972 }
 0xabe   : > { %v1115_v41 = vsel %vm562_vm1, %v1973_v40, 0.0 }
 0xabf   : > { %1116 = vadd.xlane.f32.xlu1 %v1115_v41 }
 0xac5   : > { %v1149_v42 = vpop.permute.xlu0 %1148 }
 0xac6   : > { %1779 = vmatpush.xpose.msk.msrb.mxu1 %vm562_vm1, %v1149_v42 }
 0xac9   : > { %1780 = vmatmul.msk.f32.vlgmr.msrb.gmra.mxu1 %vm562_vm1, %v1147_v39 }
 0xaca   : > { %1785 = vmatpush.xpose.msk.msra.mxu1 %vm562_vm1, %v1281_v43 }
 0xacd   : > { %v1215_v44 = vpop.permute.xlu0 %1214 }
 0xace   : > { %1782 = vmatpush.xpose.msk.msra.mxu0 %vm562_vm1, %v1215_v44 }
 0xad5   : > { %v1279_v45 = vpop.permute.xlu0 %1278 }
 0xad6   : > { %1786 = vmatmul.msk.f32.vlgmr.msra.gmra.mxu1 %vm562_vm1, %v1279_v45 }
 0xad8   : > { %1212 = vrot.lane.b32.xlu1 %v2357_v30, %s2556_s17  ;;  %s1644_s17 = sshll.u32 %s511_s24, 4  ;;  %s1645_s17 = int_to_ptr.vmem [resolvable:$true] %s1644_s17 }
 0xb32   : > { %v1117_v46 = vpop.xlane.xlu1 %1116 }
 0xb33   : > { %1974 = vrcp.f32 %v1117_v46 }
 0xb39   : > { %v1975_v47 = vpop.eup %1974 }
 0xb3a   : > { %v1119_v48 = vmul.f32 %v1975_v47, %v1973_v40 }
 0xb3c   : > { %1778 = vmatmul.msk.f32.vlgmr.msrb.gmra.mxu0 %vm562_vm1, %v1119_v48  ;;  %v1872_v48 = vld [vmem:[%s2514_s6 + $0x18] sm:$0xff] }
 0xb3d   : > { %1391 = vmatpush.bf16.msrb.mxu0 %v1870_v27  ;;  %v1877_v27 = vld [vmem:[%s2522_s14] sm:$0xff] }
 0xb46   : > { %v1171_v49 = vpop.f32.mrf.mxu1 }
 0xb47   : > { %v1174_v50 = vmul.f32 0.35355338, %v1171_v49  ;;  %v1876_v49 = vld [vmem:[%s2516_s8 + $0x38] sm:$0xff] }
 0xb48   : > { %1519 = vmatpush.bf16.msrb.mxu1 %v1876_v49 }
 0xb49   : > { %v1175_v51 = vsel %vm562_vm1, %v1174_v50, -inf }
 0xb4a   : > { %v1213_v52 = vpop.permute.xlu1 %1212  ;;  %1176 = vmax.xlane.f32.xlu2 %v1175_v51 }
 0xb4b   : > { %1783 = vmatmul.msk.f32.vlgmr.msra.gmra.mxu0 %vm562_vm1, %v1213_v52  ;;  %v1875_v52 = vld [vmem:[%s2516_s8 + $0x30] sm:$0xff] }
 0xb4c   : > { %1520 = vmatpush.bf16.msrb.mxu1 %v1875_v52 }
 0xb53   : > { %v1303_v53 = vpop.f32.mrf.mxu1 }
 0xb54   : > { %v1306_v54 = vmul.f32 0.35355338, %v1303_v53 }
 0xb56   : > { %v1307_v55 = vsel %vm562_vm1, %v1306_v54, -inf }
 0xb57   : > { %1308 = vmax.xlane.f32.xlu0 %v1307_v55 }
 0xb6b   : > { %1186 = vrot.lane.b32.xlu0 %v2357_v30, %s2557_s27  ;;  %s1646_s27 = sshll.u32 %s1642_s21, 4  ;;  %s1647_s27 = int_to_ptr.hbm [resolvable:$true] %s1646_s27 }
 0xbb9   : > { %v1143_v58 = vpop.f32.mrf.mxu0 }
 0xbbd   : > { %v1177_v56 = vpop.xlane.xlu2 %1176 }
 0xbbe   : > { %v1178_v57 = vsub.f32 %v1174_v50, %v1177_v56 }
 0xbc0   : > { %v1179_v59 = vmul.f32 1.442695, %v1178_v57 }
 0xbc2   : > { %1976 = vpow2.f32 %v1179_v59 }
 0xbc8   : > { %v1977_v60 = vpop.eup %1976  ;;  %v1237_v61 = vpop.f32.mrf.mxu0 }
 0xbc9   : > { %v1240_v62 = vmul.f32 0.35355338, %v1237_v61  ;;  %v1181_v63 = vsel %vm562_vm1, %v1977_v60, 0.0 }
 0xbca   : > { %v1309_v0 = vpop.xlane.xlu0 %1308  ;;  %1182 = vadd.xlane.f32.xlu2 %v1181_v63 }
 0xbcb   : > { %v1310_v1 = vsub.f32 %v1306_v54, %v1309_v0  ;;  %v1241_v2 = vsel %vm562_vm1, %v1240_v62, -inf }
 0xbcc   : > { %1242 = vmax.xlane.f32.xlu1 %v1241_v2 }
 0xbcd   : > { %v1311_v3 = vmul.f32 1.442695, %v1310_v1 }
 0xbcf   : > { %1978 = vpow2.f32 %v1311_v3  ;;  %v1874_v3 = vld [vmem:[%s2516_s8 + $0x28] sm:$0xff] }
 0xbd0   : > { %1521 = vmatpush.bf16.msrb.mxu1 %v1874_v3 }
 0xbd5   : > { %v1979_v4 = vpop.eup %1978 }
 0xbd6   : > { %v1313_v6 = vsel %vm562_vm1, %v1979_v4, 0.0 }
 0xbd7   : > { %1314 = vadd.xlane.f32.xlu2 %v1313_v6  ;;  %v1946_v6 = vld [vmem:[%s2515_s7 + $0x1] ss:$0 sm:$0xff] }
 0xbdd   : > { %v1187_v7 = vpop.permute.xlu0 %1186 }
 0xbde   : > { %1207 = vmatpush.msra.mxu3 %v1187_v7 }
 0xbef   : > { %1318 = vrot.lane.b32.xlu2 %v2357_v30, %s2558_s29  ;;  %s2012_s29 = sshra.s32 %s1647_s27, 4  ;;  %s2013_s29 = int_to_ptr.hbm [resolvable:$true] %s2012_s29 }
 0xbf0   : > { %p2019_p0 = scmp.lt.s32.totalorder %s2013_s29, %s2524_s16 }
 0xc3d   : > { %v1183_v8 = vpop.xlane.xlu2 %1182 }
 0xc3e   : > { %1980 = vrcp.f32 %v1183_v8 }
 0xc3f   : > { %v1243_v9 = vpop.xlane.xlu1 %1242 }
 0xc40   : > { %v1244_v10 = vsub.f32 %v1240_v62, %v1243_v9  ;;  %v1945_v62 = vld [vmem:[%s2519_s11 + $0x1] ss:$0 sm:$0xff] }
 0xc42   : > { %v1245_v11 = vmul.f32 1.442695, %v1244_v10 }
 0xc44   : > { %v1981_v12 = vpop.eup %1980  ;;  %1982 = vpow2.f32 %v1245_v11 }
 0xc45   : > { %v1185_v13 = vmul.f32 %v1981_v12, %v1977_v60  ;;  %v1944_v60 = vld [vmem:[%s2518_s10 + $0x1] ss:$0 sm:$0xff] }
 0xc46   : > { %v1947_v12 = vld [vmem:[%s2517_s9 + $0x1] ss:$0 sm:$0xff] }
 0xc47   : > { %1781 = vmatmul.msk.f32.vlgmr.msra.gmra.mxu3 %vm562_vm1, %v1185_v13 }
 0xc4a   : > { %v1983_v14 = vpop.eup %1982  ;;  %v1315_v15 = vpop.xlane.xlu2 %1314 }
 0xc4b   : > { %1984 = vrcp.f32 %v1315_v15  ;;  %v1247_v16 = vsel %vm562_vm1, %v1983_v14, 0.0 }
 0xc4c   : > { %1248 = vadd.xlane.f32.xlu1 %v1247_v16 }
 0xc51   : > { %v1985_v17 = vpop.eup %1984 }
 0xc52   : > { %v1317_v18 = vmul.f32 %v1985_v17, %v1979_v4  ;;  %v1319_v19 = vpop.permute.xlu2 %1318  ;;  %v1873_v4 = vld [vmem:[%s2516_s8 + $0x20] sm:$0xff] }
 0xc53   : > { %1339 = vmatpush.msrb.mxu3 %v1319_v19  ;;  %1522 = vmatpush.bf16.msrb.mxu1 %v1873_v4 }
 0xc54   : > { %1787 = vmatmul.msk.f32.vlgmr.msrb.gmra.mxu3 %vm562_vm1, %v1317_v18 }
 0xc65   : > { %1252 = vrot.lane.b32.xlu1 %v2357_v30, %s2559_s18  ;;  %v1869_v30 = vld [vmem:[%s2512_s4 + $0x10] sm:$0xff]  ;;  %s2014_s18 = scalar_lea.hbm %s2013_s29, 1 }
 0xc66   : > { %1392 = vmatpush.bf16.msrb.mxu0 %v1869_v30  ;;  %p2015_p11 = scmp.ne.s32.totalorder %s2013_s29, %s2014_s18  ;;  %p2020_p1 = scmp.lt.s32.totalorder %s2018_s30, %s2014_s18 }
 0xc68   : > { %p2016_p12 = pnand %p2015_p11, %p2201_p5  ;;  %p2021_p2 = por %p2020_p1, %p2019_p0 }
 0xc6a   : > { %p2017_p13 = pneg %p2016_p12 }
 0xc6c   : > { %p2022_p3 = pnand %p2021_p2, %p2017_p13 }
 0xcbf   : > { %v1249_v21 = vpop.xlane.xlu1 %1248 }
 0xcc0   : > { %1986 = vrcp.f32 %v1249_v21 }
 0xcc6   : > { %v1987_v22 = vpop.eup %1986 }
 0xcc7   : > { %v1251_v23 = vmul.f32 %v1987_v22, %v1983_v14 }
 0xcca   : > { %v1209_v20 = vpop.f32.mrf.mxu3 }
 0xccb   : > { %1345 = vrot.lane.b32.xlu0 %v1209_v20, %s2560_s19 }
 0xcd7   : > { %v1253_v24 = vpop.permute.xlu1 %1252  ;;  %v1341_v26 = vpop.f32.mrf.mxu3 }
 0xcd8   : > { %1273 = vmatpush.msra.mxu2 %v1253_v24  ;;  %1353 = vrot.lane.b32.xlu2 %v1341_v26, %s2561_s26  ;;  %v1878_v24 = vld [vmem:[%s2522_s14 + $0x8] sm:$0xff] }
 0xcd9   : > { %1784 = vmatmul.msk.f32.vlgmr.msra.gmra.mxu2 %vm562_vm1, %v1251_v23  ;;  %1605 = vmatpush.bf16.msra.mxu3 %v1878_v24 }
 0xcda   : > { %1465 = vmatpush.bf16.msrb.mxu2 %v1872_v48 }
 0xcdd   : > { %1606 = vmatpush.bf16.msra.mxu3 %v1877_v27 }
 0xd32   : > { %v1354_v33 = vpop.permute.xlu2 %1353 }
 0xd3d   : > { %v1346_v31 = vpop.permute.xlu0 %1345 }
 0xd3e   : > { %v1356_v32 = vsel %vm562_vm1, %v1143_v58, %v1346_v31 }
 0xd5c   : > { %v1275_v29 = vpop.f32.mrf.mxu2 }
 0xd5d   : > { %1349 = vrot.lane.b32.xlu0 %v1275_v29, %s2562_s28 }
 0xdcf   : > { %v1350_v5 = vpop.permute.xlu0 %1349 }
 0xdd0   : > { %v1357_v34 = vsel %vm836_vm2, %v1356_v32, %v1350_v5  ;;  %v2077_v5 = vmov 8.0  }
 0xdd1   : > { %v1358_v35 = vsel %vm838_vm3, %v1357_v34, %v1354_v33 }
 0xdd2   : > { %v1359_v36 = vpack.c.bf16 %v1358_v35, %v1358_v35 }
 0xdd4   : > { %1801 = vmatmul.msk.bf16.vlgmr.msrb.gmra.mxu0 %vm542_vm0, %v1359_v36 }
 0xe51   : > { %v1394_v38 = vpop.f32.mrf.mxu0 }
 0xe52   : > { %v1395_v39 = vadd.f32 %v1943_v37, %v1394_v38  ;;  %v1949_v38 = vld [vmem:[%s2521_s13 + $0x1] ss:$0 sm:$0xff] }
 0xe54   : > { %v1398_v40 = vadd.f32 %v1395_v39, %v2349_v25  ;;  %v1871_v25 = vld [vmem:[%s2514_s6 + $0x10] sm:$0xff] }
 0xe55   : > { %1466 = vmatpush.bf16.msrb.mxu2 %v1871_v25 }
 0xe56   : > { %v1403_v41 = vsel %vm542_vm0, %v1398_v40, 0.0 }
 0xe57   : > { %1404 = vadd.xlane.f32.xlu1 %v1403_v41 }
 0xe59   : > { %v1396_v42 = vpop.f32.mrf.mxu0 }
 0xeca   : > { %v1405_v43 = vpop.xlane.xlu1 %1404 }
 0xecb   : > { %v1406_v44 = vmul.f32 %v1405_v43, %v2296_v28 }
 0xecd   : > { %v1407_v45 = vsub.f32 %v1398_v40, %v1406_v44 }
 0xecf   : > { %v1408_v46 = vmul.f32 %v1407_v45, %v1407_v45 }
 0xed1   : > { %v1409_v47 = vsel %vm542_vm0, %v1408_v46, 0.0 }
 0xed2   : > { %1410 = vadd.xlane.f32.xlu0 %v1409_v47 }
 0xf45   : > { %v1411_v50 = vpop.xlane.xlu0 %1410 }
 0xf46   : > { %v1412_v51 = vmul.f32 %v1411_v50, %v2296_v28 }
 0xf48   : > { %v1413_v53 = vadd.f32 1e-05, %v1412_v51 }
 0xf4a   : > { %1988 = vrsqrt.f32 %v1413_v53  ;;  %vm1420_vm13 = vweird.f32 %v1413_v53 }
 0xf50   : > { %v1989_v54 = vpop.eup %1988 }
 0xf51   : > { %v1415_v55 = vmul.f32 %v1989_v54, %v1413_v53  ;;  %vm1421_vm12 = vweird.f32 %v1989_v54 }
 0xf52   : > { %vm1422_vm14 = vmor %vm1420_vm13, %vm1421_vm12 }
 0xf53   : > { %v1416_v56 = vmul.f32 %v1989_v54, %v1415_v55  ;;  %v1583_v55 = vld [vmem:[%s2523_s15] sm:$0x1] }
 0xf55   : > { %v1417_v57 = vmul.f32 0.5, %v1416_v56 }
 0xf57   : > { %v1418_v58 = vsub.f32 1.5, %v1417_v57 }
 0xf59   : > { %v1419_v59 = vmul.f32 %v1989_v54, %v1418_v58 }
 0xf5b   : > { %v1423_v61 = vsel %vm1422_vm14, %v1989_v54, %v1419_v59 }
 0xf5c   : > { %v1424_v63 = vmul.f32 %v1423_v61, %v1407_v45 }
 0xf5e   : > { %v1428_v0 = vmul.f32 %v1944_v60, %v1424_v63 }
 0xf60   : > { %v1432_v1 = vadd.f32 %v1945_v62, %v1428_v0 }
 0xf62   : > { %v1433_v2 = vpack.c.bf16 %v1432_v1, %v1432_v1 }
 0xf64   : > { %1817 = vmatmul.msk.bf16.vlgmr.msrb.gmra.mxu2 %vm542_vm0, %v1433_v2 }
 0xfe7   : > { %v1468_v7 = vpop.f32.mrf.mxu2 }
 0xfe8   : > { %v1469_v8 = vadd.f32 %v1946_v6, %v1468_v7 }
 0xfea   : > { %v1472_v9 = vmax.f32 %v1469_v8, 0.0 }
 0xfec   : > { %v1473_v10 = vpack.c.bf16 %v1472_v9, %v1472_v9 }
 0xfee   : > { %1843 = vmatmul.msk.bf16.vlgmr.msrb.gmra.mxu1 %vm992_vm8, %v1473_v10 }
 0xfef   : > { %v1470_v11 = vpop.f32.mrf.mxu2 }
0x106b   : > { %v1524_v13 = vpop.f32.mrf.mxu1 }
0x106c   : > { %v1525_v14 = vadd.f32 %v1947_v12, %v1524_v13 }
0x106e   : > { %v1528_v15 = vadd.f32 %v1525_v14, %v1432_v1 }
0x1070   : > { %v1533_v16 = vsel %vm542_vm0, %v1528_v15, 0.0 }
0x1071   : > { %1534 = vadd.xlane.f32.xlu2 %v1533_v16 }
0x1073   : > { %v1526_v17 = vpop.f32.mrf.mxu1 }
0x10e4   : > { %v1535_v18 = vpop.xlane.xlu2 %1534 }
0x10e5   : > { %v1536_v19 = vmul.f32 %v1535_v18, %v2296_v28 }
0x10e7   : > { %v1537_v20 = vsub.f32 %v1528_v15, %v1536_v19 }
0x10e9   : > { %v1538_v21 = vmul.f32 %v1537_v20, %v1537_v20 }
0x10eb   : > { %v1539_v22 = vsel %vm542_vm0, %v1538_v21, 0.0 }
0x10ec   : > { %1540 = vadd.xlane.f32.xlu1 %v1539_v22 }
0x115f   : > { %v1541_v23 = vpop.xlane.xlu1 %1540 }
0x1160   : > { %v1542_v26 = vmul.f32 %v1541_v23, %v2296_v28  ;;  %v1948_v28 = vld [vmem:[%s2520_s12 + $0x1] ss:$0 sm:$0xff] }
0x1162   : > { %v1543_v29 = vadd.f32 1e-05, %v1542_v26 }
0x1164   : > { %1990 = vrsqrt.f32 %v1543_v29  ;;  %vm1550_vm1 = vweird.f32 %v1543_v29 }
0x1165   : > { %1992 = vrcp.f32 %v2077_v5 }
0x116a   : > { %v1991_v30 = vpop.eup %1990 }
0x116b   : > { %v1545_v31 = vmul.f32 %v1991_v30, %v1543_v29  ;;  %vm1551_vm15 = vweird.f32 %v1991_v30  ;;  %v1993_v35 = vpop.eup %1992 }
0x116c   : > { %vm1552_vm2 = vmor %vm1550_vm1, %vm1551_vm15  ;;  %v1571_v40 = vmul.f32 8.0, %v1993_v35  ;;  %vm1575_vm3 = vweird.f32 %v1993_v35 }
0x116d   : > { %v1546_v32 = vmul.f32 %v1991_v30, %v1545_v31 }
0x116e   : > { %v1572_v43 = vsub.f32 1.0, %v1571_v40 }
0x116f   : > { %v1547_v33 = vmul.f32 0.5, %v1546_v32 }
0x1170   : > { %v1573_v46 = vmul.f32 %v1993_v35, %v1572_v43 }
0x1171   : > { %v1548_v34 = vsub.f32 1.5, %v1547_v33 }
0x1172   : > { %v1574_v25 = vadd.f32 %v1993_v35, %v1573_v46 }
0x1173   : > { %v1549_v36 = vmul.f32 %v1991_v30, %v1548_v34 }
0x1174   : > { %v1576_v51 = vsel %vm1575_vm3, %v1993_v35, %v1574_v25 }
0x1175   : > { %v1553_v37 = vsel %vm1552_vm2, %v1991_v30, %v1549_v36 }
0x1176   : > { %v1554_v39 = vmul.f32 %v1553_v37, %v1537_v20 }
0x1178   : > { %v1558_v41 = vmul.f32 %v1948_v28, %v1554_v39 }
0x117a   : > { %v1562_v42 = vadd.f32 %v1949_v38, %v1558_v41 }
0x117c   : > { %v1563_v44 = vsel %vm542_vm0, %v1562_v42, 0.0 }
0x117d   : > { %v1564_v45 = vrot.slane %v1563_v44, 4 }
0x117f   : > { %v1565_v47 = vadd.f32 %v1564_v45, %v1563_v44 }
0x1181   : > { %v1566_v48 = vrot.slane %v1565_v47, 2 }
0x1183   : > { %v1567_v49 = vadd.f32 %v1566_v48, %v1565_v47 }
0x1185   : > { %v1568_v50 = vrot.slane %v1567_v49, 1 }
0x1187   : > { %v1569_v52 = vadd.f32 %v1568_v50, %v1567_v49 }
0x1189   : > { %v1577_v53 = vmul.f32 %v1576_v51, %v1569_v52 }
0x118b   : > { %v1578_v54 = vpack.c.bf16 %v1577_v53, %v1577_v53 }
0x118d   : > { %1854 = vmatmul.msk.bf16.vlgmr.msra.gmra.mxu3 %vm542_vm0, %v1578_v54 }
0x1210   : > { %v1608_v56 = vpop.f32.mrf.mxu3 }
0x1211   : > { %v1609_v57 = vadd.f32 %v1608_v56, %v1583_v55 }
0x1213   : > { %v1612_v58 = vsub.f32 0.0, %v1609_v57 }
0x1215   : > { %v1613_v59 = vmul.f32 1.442695, %v1612_v58 }
0x1217   : > { %1994 = vpow2.f32 %v1613_v59 }
0x1218   : > { %v1610_v60 = vpop.f32.mrf.mxu3 }
0x121d   : > { %v1995_v61 = vpop.eup %1994 }
0x121e   : > { %v1615_v62 = vadd.f32 1.0, %v1995_v61 }
0x1220   : > { %1996 = vrcp.f32 %v1615_v62  ;;  %v1627_v2 = vand.u32 2147483648, %v1615_v62  ;;  %v1625_v4 = vand.u32 2147483647, %v1615_v62  ;;  %vm1621_vm4 = vweird.f32 %v1615_v62 }
0x1222   : > { %v1628_v7 = vor.u32 1.1754944e-38, %v1627_v2  ;;  %vm1626_vm7 = vcmp.eq.f32.partialorder %v1625_v4, 8.507059e+37 }
0x1226   : > { %v1997_v63 = vpop.eup %1996 }
0x1227   : > { %v1617_v0 = vmul.f32 %v1997_v63, %v1615_v62  ;;  %vm1622_vm0 = vweird.f32 %v1997_v63 }
0x1228   : > { %vm1623_vm5 = vmor %vm1621_vm4, %vm1622_vm0 }
0x1229   : > { %v1618_v1 = vsub.f32 1.0, %v1617_v0 }
0x122b   : > { %v1619_v3 = vmul.f32 %v1997_v63, %v1618_v1 }
0x122d   : > { %v1620_v6 = vadd.f32 %v1997_v63, %v1619_v3 }
0x122f   : > { %v1624_v8 = vsel %vm1623_vm5, %v1997_v63, %v1620_v6 }
0x1230   : > { %v1629_v9 = vsel %vm1626_vm7, %v1628_v7, %v1624_v8 }
0x1231   : > { %1632 = vst.msk [vmem:[%s511_s24] sm:$0x1] %vm1631_vm6, %v1629_v9 }
0x1232   : > { %2025 = shalt.err (!%p2022_p3)
}
0x1233   : > { %1879 = dma.vmem_to_hbm [thread:$0]  (%p2201_p5), %s1645_s17, 16, %s1647_s27, %s1634_s25  }
0x1234 PF: > { %s2563_s20 = sld [smem:[#allocation7_spill]] }
0x1235   : > { %s2564_s21 = sld [smem:[#allocation5_spill]] }
0x123a   : > { %p1885_p4 = scmp.ge.s32.totalorder %s2563_s20, 2 }
0x123b   : > { %s1658_s1 = sand.u32 1, %s2564_s21  }
0x123c   : > { %p1882_p7 = pnand %p1885_p4, %p2205_p6  ;;  %s1659_s19 = scalar_lea.sflag [#allocation3], %s1658_s1 }
0x123e   : > { %p1883_p8 = pneg %p1882_p7 }
0x1240   : > { %2043 = dma.done.wait (%p1883_p8), %s1659_s19, 16  }
0x1241   : > { %2045 = vsyncadd (%p1883_p8), %s1659_s19, 4294967280  ;;  %s2566_s24 = sld [smem:[#allocation8_spill]]  ;;  %s2569_s21 = smov %s2052_s22 }
0x1242   : > { %s2567_s29 = sld [smem:[#allocation6_spill]] }
0x1243   : > { %s2568_s23 = sld [smem:[#allocation9_spill]] }
0x1247   : > { %p26_p9 = scmp.ge.s32.totalorder %s2566_s24, 4  }
0x1248   : > { %s2570_s22 = smov %s2567_s29 }
0x1249   :  { %28 = sbr.rel (!%p26_p9) target bundleno = 6 (0x6), region = 131 }
0x124e   :  { %1664 = vsyncpa [#allocation3], 1 }
0x124f   :  { %1666 = vsyncpa [#allocation3 + $0x1], 1 }

</bundles_post_ra>
